<compile_context>
chip_gen: v5e
topology: v5e:2x2
jax: 0.10.0
libtpu: 0.0.40
codegen_flags: <defaults>
</compile_context>

<pallas_src>
import jax
import jax.numpy as jnp
from jax import lax
from jax.experimental import pallas as pl
from jax.experimental.pallas import tpu as pltpu

_EPS = 1e-8
_LANE = 128
_PREF_TILE = 512        # preferred row / contraction tile; sweep 512/1024 for real graphs


# ----------------------------------------------------------------------------
# Padding / tiling helpers (all zero padding: degrees and aggregates stay exact)
# ----------------------------------------------------------------------------
def _round_up(n, m):
    return ((n + m - 1) // m) * m


def _pick_tiles(n, pref=_PREF_TILE):
    """Pad a node count and pick a tile that divides it.

    Prefers `pref`-sized tiles; when the padded axis is exactly one preferred tile,
    splits it in two so v7x's two TensorCores both get work on the 'parallel' axis."""
    n_p = _round_up(max(int(n), 1), 256)
    if n_p <= 256:
        return n_p, n_p
    n_p = _round_up(n_p, pref)
    tile = pref // 2 if n_p == pref else pref
    return n_p, tile


def _vmem_limit_bytes(*block_bytes):
    """Explicit scoped-VMEM limit: double-buffered blocks + headroom, clamped so the
    same tiling compiles on v5e (16 MiB scoped default) through v7x (64 MiB physical)."""
    est = 2 * sum(int(b) for b in block_bytes) + (8 << 20)
    return int(min(60 << 20, max(32 << 20, est)))


def _pad2(x, rows, cols, dtype):
    out = jnp.zeros((rows, cols), dtype)
    return out.at[:x.shape[0], :x.shape[1]].set(x.astype(dtype))


def _pad_src_with_deg_lane(x, rows, d_pad):
    """Zero-pad features to (rows, d_pad) bf16 and set lane x.shape[1] to 1.0: the
    degree then falls out of the aggregation matmul for free (the matching W1 row is
    zero, so the extra lane never reaches the MLP)."""
    d = x.shape[1]
    out = _pad2(x, rows, d_pad, jnp.bfloat16)
    return out.at[:, d].set(jnp.bfloat16(1.0))


def _pad_w_rows(w, rows):
    return jnp.pad(w, ((0, rows - w.shape[0]), (0, 0)))


# ----------------------------------------------------------------------------
# Kernel 1: fused "aggregate src nodes into dst nodes (column-degree norm) + MLP"
#           (FirstConv; UserConv when self-features are supplied, via split-K GEMM)
# grid = (dst_row_tiles [parallel], src_k_tiles [arbitrary])
# ----------------------------------------------------------------------------
def _make_agg_mlp_kernel(deg_col, has_self):

    def body(adj_ref, src_ref, w1_agr_ref, b1_ref, w2_ref, b2_ref,
             out_ref, agr_acc, self_ref=None, w1_self_ref=None):
        k = pl.program_id(1)

        @pl.when(k == 0)
        def _():
            agr_acc[...] = jnp.zeros_like(agr_acc)

        # int8 adjacency tile -> bf16; MXU consumes it LHS-transposed (contract dim 0):
        # no explicit transpose, no f32 copy, no XLU work on the big tile.
        adj_bf = adj_ref[...].astype(jnp.bfloat16)                   # (k_tile, row_tile)
        agr_acc[...] += lax.dot_general(
            adj_bf, src_ref[...],
            dimension_numbers=(((0,), (0,)), ((), ())),
            preferred_element_type=jnp.float32)                      # (row_tile, d_src_p)

        @pl.when(k == pl.num_programs(1) - 1)
        def _():
            agr = agr_acc[...]
            deg = agr[:, deg_col:deg_col + 1]            # ones lane of src == column degree
            inv = pl.reciprocal(deg + _EPS, approx=True)             # EUP slot
            agr = (agr * inv).astype(jnp.bfloat16)
            h = jnp.dot(agr, w1_agr_ref[...], preferred_element_type=jnp.float32)
            if self_ref is not None:                     # split-K GEMM == concat([self, agr]) @ W1
                h += jnp.dot(self_ref[...], w1_self_ref[...],
                             preferred_element_type=jnp.float32)
            h = jnp.tanh(h + b1_ref[...]).astype(jnp.bfloat16)
            out_ref[...] = (jnp.dot(h, w2_ref[...], preferred_element_type=jnp.float32)
                            + b2_ref[...])

    if has_self:
        def kernel(adj_ref, src_ref, self_ref, w1_self_ref, w1_agr_ref,
                   b1_ref, w2_ref, b2_ref, out_ref, agr_acc):
            body(adj_ref, src_ref, w1_agr_ref, b1_ref, w2_ref, b2_ref,
                 out_ref, agr_acc, self_ref=self_ref, w1_self_ref=w1_self_ref)
    else:
        def kernel(adj_ref, src_ref, w1_agr_ref, b1_ref, w2_ref, b2_ref,
                   out_ref, agr_acc):
            body(adj_ref, src_ref, w1_agr_ref, b1_ref, w2_ref, b2_ref,
                 out_ref, agr_acc)
    return kernel


def fused_agg_mlp(adj, src, deg_col, w1_agr, b1, w2, b2,
                  self_feats=None, w1_self=None, *, row_tile, k_tile):
    """out = MLP([self ;] (adj^T @ src) / colsum(adj)).

    adj: (n_src_p, n_dst_p) int8; src: (n_src_p, d_src_p) bf16 with ones at lane deg_col.
    """
    n_src_p, n_dst_p = adj.shape
    d_src_p = src.shape[1]
    d_out = w2.shape[1]
    has_self = self_feats is not None
    grid = (n_dst_p // row_tile, n_src_p // k_tile)

    in_specs = [
        pl.BlockSpec((k_tile, row_tile), lambda i, k: (k, i)),       # int8 adjacency tile
        pl.BlockSpec((k_tile, d_src_p), lambda i, k: (k, 0)),        # bf16 source features
    ]
    inputs = [adj, src]
    block_bytes = [k_tile * row_tile, k_tile * d_src_p * 2]
    if has_self:
        in_specs += [pl.BlockSpec((row_tile, self_feats.shape[1]), lambda i, k: (i, 0)),
                     pl.BlockSpec(w1_self.shape, lambda i, k: (0, 0))]
        inputs += [self_feats, w1_self]
        block_bytes += [row_tile * self_feats.shape[1] * 2, w1_self.size * 2]
    in_specs += [pl.BlockSpec(w1_agr.shape, lambda i, k: (0, 0)),
                 pl.BlockSpec(b1.shape, lambda i, k: (0, 0)),
                 pl.BlockSpec(w2.shape, lambda i, k: (0, 0)),
                 pl.BlockSpec(b2.shape, lambda i, k: (0, 0))]
    inputs += [w1_agr, b1, w2, b2]
    block_bytes += [w1_agr.size * 2, b1.size * 4, w2.size * 2, b2.size * 4,
                    row_tile * d_out * 4, row_tile * d_src_p * 4]

    return pl.pallas_call(
        _make_agg_mlp_kernel(deg_col, has_self),
        out_shape=jax.ShapeDtypeStruct((n_dst_p, d_out), jnp.float32),
        grid=grid,
        in_specs=in_specs,
        out_specs=pl.BlockSpec((row_tile, d_out), lambda i, k: (i, 0)),
        scratch_shapes=[pltpu.VMEM((row_tile, d_src_p), jnp.float32)],   # aggregate + degree acc
        compiler_params=pltpu.CompilerParams(
            dimension_semantics=("parallel", "arbitrary"),
            vmem_limit_bytes=_vmem_limit_bytes(*block_bytes)),
    )(*inputs)


# ----------------------------------------------------------------------------
# Kernel 2: NewsConv row-aggregation per attribute: (adj @ ft) / rowdeg, bf16 output.
# grid = (news_row_tiles [parallel], attr_k_tiles [arbitrary])  -> bounded VMEM on v7x
# ----------------------------------------------------------------------------
def _make_row_agg_kernel(deg_col, d_out):
    def kernel(adj_ref, ft_ref, out_ref, acc_ref):
        k = pl.program_id(1)

        @pl.when(k == 0)
        def _():
            acc_ref[...] = jnp.zeros_like(acc_ref)

        adj_bf = adj_ref[...].astype(jnp.bfloat16)                   # (row_tile, k_tile)
        acc_ref[...] += jnp.dot(adj_bf, ft_ref[...],
                                preferred_element_type=jnp.float32)

        @pl.when(k == pl.num_programs(1) - 1)
        def _():
            acc = acc_ref[...]
            deg = acc[:, deg_col:deg_col + 1]            # ones lane of ft == row degree
            inv = pl.reciprocal(deg + _EPS, approx=True)
            out_ref[...] = (acc[:, :d_out] * inv).astype(out_ref.dtype)
    return kernel


def row_agg(adj, ft, deg_col, d_out, *, row_tile, k_tile):
    n_rows_p, n_cols_p = adj.shape
    d_pad = ft.shape[1]
    grid = (n_rows_p // row_tile, n_cols_p // k_tile)
    block_bytes = [row_tile * k_tile, k_tile * d_pad * 2,
                   row_tile * d_out * 2, row_tile * d_pad * 4]
    return pl.pallas_call(
        _make_row_agg_kernel(deg_col, d_out),
        out_shape=jax.ShapeDtypeStruct((n_rows_p, d_out), jnp.bfloat16),
        grid=grid,
        in_specs=[pl.BlockSpec((row_tile, k_tile), lambda i, k: (i, k)),
                  pl.BlockSpec((k_tile, d_pad), lambda i, k: (k, 0))],
        out_specs=pl.BlockSpec((row_tile, d_out), lambda i, k: (i, 0)),
        scratch_shapes=[pltpu.VMEM((row_tile, d_pad), jnp.float32)],
        compiler_params=pltpu.CompilerParams(
            dimension_semantics=("parallel", "arbitrary"),
            vmem_limit_bytes=_vmem_limit_bytes(*block_bytes)),
    )(adj, ft)


# ----------------------------------------------------------------------------
# Kernel 3: NewsConv MLP: split-K GEMM over [news | agr_atr ...] + tanh + GEMM.
# grid = (news_row_tiles [parallel],)
# ----------------------------------------------------------------------------
def _make_news_mlp_kernel(num_atr):
    def kernel(*refs):
        idx = 0
        news = refs[idx][...]; idx += 1
        agr = [refs[idx + j][...] for j in range(num_atr)]; idx += num_atr
        w1_news = refs[idx][...]; idx += 1
        w1_atr = [refs[idx + j][...] for j in range(num_atr)]; idx += num_atr
        b1 = refs[idx][...]; idx += 1
        w2 = refs[idx][...]; idx += 1
        b2 = refs[idx][...]; idx += 1
        out_ref = refs[idx]

        h = jnp.dot(news, w1_news, preferred_element_type=jnp.float32)
        for a, w in zip(agr, w1_atr):                    # split-K GEMM == concat + GEMM
            h += jnp.dot(a, w, preferred_element_type=jnp.float32)
        h = jnp.tanh(h + b1).astype(jnp.bfloat16)
        out_ref[...] = jnp.dot(h, w2, preferred_element_type=jnp.float32) + b2
    return kernel


def news_mlp(news, agr_list, w1_news, w1_atr_list, b1, w2, b2, *, row_tile):
    n_news_p = news.shape[0]
    d_out = w2.shape[1]
    grid = (n_news_p // row_tile,)

    in_specs = [pl.BlockSpec((row_tile, news.shape[1]), lambda i: (i, 0))]
    inputs = [news]
    for a in agr_list:
        in_specs.append(pl.BlockSpec((row_tile, a.shape[1]), lambda i: (i, 0)))
        inputs.append(a)
    in_specs.append(pl.BlockSpec(w1_news.shape, lambda i: (0, 0)))
    inputs.append(w1_news)
    for w in w1_atr_list:
        in_specs.append(pl.BlockSpec(w.shape, lambda i: (0, 0)))
        inputs.append(w)
    for p in (b1, w2, b2):
        in_specs.append(pl.BlockSpec(p.shape, lambda i: (0, 0)))
        inputs.append(p)

    block_bytes = [row_tile * news.shape[1] * 2,
                   sum(row_tile * a.shape[1] * 2 for a in agr_list),
                   w1_news.size * 2, sum(w.size * 2 for w in w1_atr_list),
                   b1.size * 4, w2.size * 2, b2.size * 4, row_tile * d_out * 4]

    return pl.pallas_call(
        _make_news_mlp_kernel(len(agr_list)),
        out_shape=jax.ShapeDtypeStruct((n_news_p, d_out), jnp.float32),
        grid=grid,
        in_specs=in_specs,
        out_specs=pl.BlockSpec((row_tile, d_out), lambda i: (i, 0)),
        compiler_params=pltpu.CompilerParams(
            dimension_semantics=("parallel",),
            vmem_limit_bytes=_vmem_limit_bytes(*block_bytes)),
    )(*inputs)


# ----------------------------------------------------------------------------
# Deterministic parameter init (mimics nn.Linear.reset_parameters bounds)
# ----------------------------------------------------------------------------
def init_linear(key, in_dim, out_dim):
    kw, kb = jax.random.split(key)
    bound = 1.0 / (in_dim ** 0.5)
    w = jax.random.uniform(kw, (in_dim, out_dim), jnp.float32, -bound, bound)
    b = jax.random.uniform(kb, (1, out_dim), jnp.float32, -bound, bound)
    return w, b


def init_mlp(key, in_dim, hidden_dim, out_dim):
    k1, k2 = jax.random.split(key)
    w1, b1 = init_linear(k1, in_dim, hidden_dim)
    w2, b2 = init_linear(k2, hidden_dim, out_dim)
    return (w1, b1, w2, b2)


# ----------------------------------------------------------------------------
# GCN forward (glue in plain JAX, hot path entirely inside the fused kernels)
# ----------------------------------------------------------------------------
class GCN:
    def __init__(self, news_dim, empty_nodes=(), atr_nodes=(), key=None):
        hidden_dim, out_dim = 256, 128
        self.news_dim = news_dim
        self.out_dim = out_dim
        self.empty_nodes = list(empty_nodes)
        self.atr_nodes = list(atr_nodes)
        # +1 lane reserved for the degree-ones column
        self.news_dim_p = _round_up(news_dim + 1, _LANE)
        self.user_src_pad = _round_up(out_dim + 1, _LANE)

        keys = jax.random.split(key, len(self.empty_nodes) + 2)

        # FirstConv MLPs; W1 rows zero-padded to the padded news width, weights in bf16.
        self.first_conv = []
        for i in range(len(self.empty_nodes)):
            w1, b1, w2, b2 = init_mlp(keys[i], news_dim, hidden_dim, out_dim)
            self.first_conv.append((_pad_w_rows(w1, self.news_dim_p).astype(jnp.bfloat16),
                                    b1, w2.astype(jnp.bfloat16), b2))

        # NewsConv: single Linear over concat([news, agr_atr...]); init once with the
        # reference's in_channels, then split W1 row-wise in the concatenation order so
        # the split-K GEMM is identical to concat-then-GEMM.
        self.atr_widths = [out_dim if a in self.empty_nodes else 100 for a in self.atr_nodes]
        news_in = (news_dim + len(self.empty_nodes) * out_dim
                   + len(set(self.atr_nodes) - set(self.empty_nodes)) * 100)
        w1, b1, w2, b2 = init_mlp(keys[-2], news_in, hidden_dim * 2, out_dim)
        widths = [news_dim] + self.atr_widths
        pieces, off = [], 0
        for w in widths:
            pieces.append(w1[off:off + w]); off += w
        self.atr_feat_pad = [_round_up(w + 1, _LANE) for w in self.atr_widths]  # ft width
        self.atr_out_pad = [_round_up(w, _LANE) for w in self.atr_widths]       # aggregate width
        self.news_w1_news = _pad_w_rows(pieces[0], self.news_dim_p).astype(jnp.bfloat16)
        self.news_w1_atr = [_pad_w_rows(p, wp).astype(jnp.bfloat16)
                            for p, wp in zip(pieces[1:], self.atr_out_pad)]
        self.news_b1, self.news_w2, self.news_b2 = b1, w2.astype(jnp.bfloat16), b2

        # UserConv: split W1 into user self-feature rows and aggregated-news rows.
        w1u, b1u, w2u, b2u = init_mlp(keys[-1], out_dim * 2, hidden_dim, out_dim)
        self.user_w1_self = w1u[:out_dim].astype(jnp.bfloat16)
        self.user_w1_agr = _pad_w_rows(w1u[out_dim:], self.user_src_pad).astype(jnp.bfloat16)
        self.user_b1, self.user_w2, self.user_b2 = b1u, w2u.astype(jnp.bfloat16), b2u

    def __call__(self, news_x, user_x, edge_index):
        n_news, n_users = news_x.shape[0], user_x.shape[0]
        n_news_p, t_news = _pick_tiles(n_news)
        n_users_p, t_users = _pick_tiles(n_users)

        # bf16 feature matrices; one lane of 1.0 so degrees come from the main matmul.
        news_src = _pad_src_with_deg_lane(news_x, n_news_p, self.news_dim_p)
        users_self = _pad2(user_x, n_users_p, self.out_dim, jnp.bfloat16)

        # Dense 0/1 adjacency padded once per attribute and streamed as int8.
        adj_p, n_dst, dst_tiles = {}, {}, {}
        for name, adj in edge_index.items():
            n_dst[name] = adj.shape[1]
            n_dst_p, t_dst = _pick_tiles(adj.shape[1])
            dst_tiles[name] = (n_dst_p, t_dst)
            adj_p[name] = _pad2(adj, n_news_p, n_dst_p, jnp.int8)

        feats = {}
        # FirstConv: fused (adj^T @ news)/coldeg -> MLP (contraction over news tiled).
        for i, atr in enumerate(self.empty_nodes):
            w1, b1, w2, b2 = self.first_conv[i]
            _, t_dst = dst_tiles[atr]
            feats[atr] = fused_agg_mlp(adj_p[atr], news_src, self.news_dim,
                                       w1, b1, w2, b2,
                                       row_tile=t_dst, k_tile=t_news)

        # NewsConv: per-attribute normalized row aggregation (bf16) + fused split-K MLP.
        agr_list = []
        for j, atr in enumerate(self.atr_nodes):
            n_atr_p, t_atr = dst_tiles[atr]
            f = feats[atr]   # KeyError for non-empty attribute types, same as the reference
            ft = _pad_src_with_deg_lane(f[:n_dst[atr]], n_atr_p, self.atr_feat_pad[j])
            agr_list.append(row_agg(adj_p[atr], ft, self.atr_widths[j],
                                    self.atr_out_pad[j],
                                    row_tile=t_news, k_tile=t_atr))
        news_out = news_mlp(news_src, agr_list, self.news_w1_news, self.news_w1_atr,
                            self.news_b1, self.news_w2, self.news_b2, row_tile=t_news)

        # UserConv: fused aggregation of the updated news into users + split-K MLP.
        user_src = _pad_src_with_deg_lane(news_out, n_news_p, self.user_src_pad)
        users_out = fused_agg_mlp(adj_p['users'], user_src, self.out_dim,
                                  self.user_w1_agr, self.user_b1,
                                  self.user_w2, self.user_b2,
                                  self_feats=users_self, w1_self=self.user_w1_self,
                                  row_tile=dst_tiles['users'][1], k_tile=t_news)

        out = {atr: feats[atr][:n_dst[atr]] for atr in self.empty_nodes}
        out['news'] = news_out[:n_news]
        out['users'] = users_out[:n_users]
        return out


if __name__ == "__main__":
    key = jax.random.PRNGKey(0)
    k_news, k_user, k_at, k_au, k_params = jax.random.split(key, 5)

    news_dim = 64
    n_news, n_topic, n_users = 16, 8, 12
    out_dim = 128

    news_x = jax.random.normal(k_news, (n_news, news_dim), jnp.float32)
    # TODO(synk): the original GCN.forward never fills subgraph_feats['users'] before
    # UserConv reads it (would KeyError); we supply it as an explicit (n_users, 128) input.
    user_x = jax.random.normal(k_user, (n_users, out_dim), jnp.float32)

    # Dense binary adjacencies (news x topic), (news x users) — dense stand-in for the
    # torch_sparse SparseTensor of the reference.
    adj_topic = (jax.random.uniform(k_at, (n_news, n_topic)) < 0.4).astype(jnp.float32)
    adj_users = (jax.random.uniform(k_au, (n_news, n_users)) < 0.4).astype(jnp.float32)
    edge_index = {'topic': adj_topic, 'users': adj_users}

    model = GCN(news_dim, empty_nodes=['topic'], atr_nodes=['topic'], key=k_params)
    feats = model(news_x, user_x, edge_index)
    feats = jax.block_until_ready(feats)

    assert feats['topic'].shape == (n_topic, 128)
    assert feats['news'].shape == (n_news, 128)
    assert feats['users'].shape == (n_users, 128)
    assert all(bool(jnp.all(jnp.isfinite(v.astype(jnp.float32)))) for v in feats.values())
    print("KERNEL_OK")
</pallas_src>

<mosaic_0001>
module attributes {stable_mosaic.version = 11 : i64} {
  func.func @kernel(%arg0: i32, %arg1: i32, %arg2: memref<256x256xi8, #tpu.memory_space<vmem>>, %arg3: memref<256x128xbf16, #tpu.memory_space<vmem>>, %arg4: memref<128x256xbf16, #tpu.memory_space<vmem>>, %arg5: memref<1x256xf32, #tpu.memory_space<vmem>>, %arg6: memref<256x128xbf16, #tpu.memory_space<vmem>>, %arg7: memref<1x128xf32, #tpu.memory_space<vmem>>, %arg8: memref<256x128xf32, #tpu.memory_space<vmem>>, %arg9: memref<256x128xf32, #tpu.memory_space<vmem>>) attributes {dimension_semantics = [#tpu.dimension_semantics<parallel>, #tpu.dimension_semantics<arbitrary>], iteration_bounds = array<i64: 1, 1>, scalar_prefetch = 0 : i64, scratch_operands = 1 : i64, tpu.core_type = #tpu.core_type<tc>, window_params = [{transform_indices = @transform_0, window_bounds = array<i64: 256, 256>}, {transform_indices = @transform_1, window_bounds = array<i64: 256, 128>}, {pipeline_mode = #tpu.pipeline_mode<synchronous>, transform_indices = @transform_2, window_bounds = array<i64: 128, 256>}, {pipeline_mode = #tpu.pipeline_mode<synchronous>, transform_indices = @transform_3, window_bounds = array<i64: 1, 256>}, {pipeline_mode = #tpu.pipeline_mode<synchronous>, transform_indices = @transform_4, window_bounds = array<i64: 256, 128>}, {pipeline_mode = #tpu.pipeline_mode<synchronous>, transform_indices = @transform_5, window_bounds = array<i64: 1, 128>}, {transform_indices = @transform_6, window_bounds = array<i64: 256, 128>}]} {
    %c0_i32 = arith.constant 0 : i32
    %0 = arith.cmpi eq, %arg1, %c0_i32 : i32
    %1 = arith.extui %0 : i1 to i32
    %c0_i32_0 = arith.constant 0 : i32
    %2 = arith.cmpi ne, %1, %c0_i32_0 : i32
    scf.if %2 {
      %cst_10 = arith.constant 0.000000e+00 : f32
      %13 = vector.broadcast %cst_10 : f32 to vector<256x128xf32>
      %c0_11 = arith.constant 0 : index
      %c0_12 = arith.constant 0 : index
      %14 = vector.load %arg9[%c0_11, %c0_12] : memref<256x128xf32, #tpu.memory_space<vmem>>, vector<256x128xf32>
      tpu.vector_store %arg9[%c0_11, %c0_12], %13 {strides = array<i32>} : memref<256x128xf32, #tpu.memory_space<vmem>>, vector<256x128xf32>,
    } else {
    }
    %c0 = arith.constant 0 : index
    %c0_1 = arith.constant 0 : index
    %3 = vector.load %arg2[%c0, %c0_1] : memref<256x256xi8, #tpu.memory_space<vmem>>, vector<256x256xi8>
    %4 = arith.sitofp %3 : vector<256x256xi8> to vector<256x256xbf16>
    %c0_2 = arith.constant 0 : index
    %c0_3 = arith.constant 0 : index
    %5 = vector.load %arg9[%c0_2, %c0_3] : memref<256x128xf32, #tpu.memory_space<vmem>>, vector<256x128xf32>
    %c0_4 = arith.constant 0 : index
    %c0_5 = arith.constant 0 : index
    %6 = vector.load %arg3[%c0_4, %c0_5] : memref<256x128xbf16, #tpu.memory_space<vmem>>, vector<256x128xbf16>
    %cst = arith.constant dense<0.000000e+00> : vector<256x128xf32>
    %7 = tpu.matmul %4, %6, %cst {dimension_numbers = #tpu.dot_dimension_numbers<[0], [0], [1], [1], [0, 1, 1, 1], [], []>} : vector<256x256xbf16>, vector<256x128xbf16>, vector<256x128xf32> -> vector<256x128xf32>
    %8 = arith.addf %5, %7 : vector<256x128xf32>
    %c0_6 = arith.constant 0 : index
    %c0_7 = arith.constant 0 : index
    %9 = vector.load %arg9[%c0_6, %c0_7] : memref<256x128xf32, #tpu.memory_space<vmem>>, vector<256x128xf32>
    tpu.vector_store %arg9[%c0_6, %c0_7], %8 {strides = array<i32>} : memref<256x128xf32, #tpu.memory_space<vmem>>, vector<256x128xf32>,
    %c0_i32_8 = arith.constant 0 : i32
    %10 = arith.cmpi eq, %arg1, %c0_i32_8 : i32
    %11 = arith.extui %10 : i1 to i32
    %c0_i32_9 = arith.constant 0 : i32
    %12 = arith.cmpi ne, %11, %c0_i32_9 : i32
    scf.if %12 {
      %c0_10 = arith.constant 0 : index
      %c0_11 = arith.constant 0 : index
      %13 = vector.load %arg9[%c0_10, %c0_11] : memref<256x128xf32, #tpu.memory_space<vmem>>, vector<256x128xf32>
      %14 = vector.extract_strided_slice %13 {offsets = [0, 64], sizes = [256, 1], strides = [1, 1]} : vector<256x128xf32> to vector<256x1xf32>
      %cst_12 = arith.constant 9.99999993E-9 : f32
      %15 = vector.broadcast %cst_12 : f32 to vector<256x1xf32>
      %16 = arith.addf %14, %15 : vector<256x1xf32>
      %17 = tpu.reciprocal %16 {approx = true} : vector<256x1xf32> -> vector<256x1xf32>
      %18 = vector.broadcast %17 : vector<256x1xf32> to vector<256x128xf32>
      %19 = arith.mulf %13, %18 : vector<256x128xf32>
      %20 = arith.truncf %19 : vector<256x128xf32> to vector<256x128xbf16>
      %c0_13 = arith.constant 0 : index
      %c0_14 = arith.constant 0 : index
      %21 = vector.load %arg4[%c0_13, %c0_14] : memref<128x256xbf16, #tpu.memory_space<vmem>>, vector<128x256xbf16>
      %cst_15 = arith.constant dense<0.000000e+00> : vector<256x256xf32>
      %22 = tpu.matmul %20, %21, %cst_15 {dimension_numbers = #tpu.dot_dimension_numbers<[1], [0], [0], [1], [0, 0, 1, 1], [], []>} : vector<256x128xbf16>, vector<128x256xbf16>, vector<256x256xf32> -> vector<256x256xf32>
      %c0_16 = arith.constant 0 : index
      %c0_17 = arith.constant 0 : index
      %23 = vector.load %arg5[%c0_16, %c0_17] : memref<1x256xf32, #tpu.memory_space<vmem>>, vector<1x256xf32>
      %24 = vector.broadcast %23 : vector<1x256xf32> to vector<256x256xf32>
      %25 = arith.addf %22, %24 : vector<256x256xf32>
      %26 = math.tanh %25 : vector<256x256xf32>
      %27 = arith.truncf %26 : vector<256x256xf32> to vector<256x256xbf16>
      %c0_18 = arith.constant 0 : index
      %c0_19 = arith.constant 0 : index
      %28 = vector.load %arg6[%c0_18, %c0_19] : memref<256x128xbf16, #tpu.memory_space<vmem>>, vector<256x128xbf16>
      %cst_20 = arith.constant dense<0.000000e+00> : vector<256x128xf32>
      %29 = tpu.matmul %27, %28, %cst_20 {dimension_numbers = #tpu.dot_dimension_numbers<[1], [0], [0], [1], [0, 0, 1, 1], [], []>} : vector<256x256xbf16>, vector<256x128xbf16>, vector<256x128xf32> -> vector<256x128xf32>
      %c0_21 = arith.constant 0 : index
      %c0_22 = arith.constant 0 : index
      %30 = vector.load %arg7[%c0_21, %c0_22] : memref<1x128xf32, #tpu.memory_space<vmem>>, vector<1x128xf32>
      %31 = vector.broadcast %30 : vector<1x128xf32> to vector<256x128xf32>
      %32 = arith.addf %29, %31 : vector<256x128xf32>
      %c0_23 = arith.constant 0 : index
      %c0_24 = arith.constant 0 : index
      %33 = vector.load %arg8[%c0_23, %c0_24] : memref<256x128xf32, #tpu.memory_space<vmem>>, vector<256x128xf32>
      tpu.vector_store %arg8[%c0_23, %c0_24], %32 {strides = array<i32>} : memref<256x128xf32, #tpu.memory_space<vmem>>, vector<256x128xf32>,
    } else {
    }
    return
  }
  func.func @transform_0(%arg0: i32, %arg1: i32) -> (i32, i32) {
    %c0_i32 = arith.constant 0 : i32
    return %arg1, %arg0 : i32, i32
  }
  func.func @transform_1(%arg0: i32, %arg1: i32) -> (i32, i32) {
    %c0_i32 = arith.constant 0 : i32
    %c0_i32_0 = arith.constant 0 : i32
    return %arg1, %c0_i32 : i32, i32
  }
  func.func @transform_2(%arg0: i32, %arg1: i32) -> (i32, i32) {
    %c0_i32 = arith.constant 0 : i32
    %c0_i32_0 = arith.constant 0 : i32
    %c0_i32_1 = arith.constant 0 : i32
    return %c0_i32, %c0_i32_0 : i32, i32
  }
  func.func @transform_3(%arg0: i32, %arg1: i32) -> (i32, i32) {
    %c0_i32 = arith.constant 0 : i32
    %c0_i32_0 = arith.constant 0 : i32
    %c0_i32_1 = arith.constant 0 : i32
    return %c0_i32, %c0_i32_0 : i32, i32
  }
  func.func @transform_4(%arg0: i32, %arg1: i32) -> (i32, i32) {
    %c0_i32 = arith.constant 0 : i32
    %c0_i32_0 = arith.constant 0 : i32
    %c0_i32_1 = arith.constant 0 : i32
    return %c0_i32, %c0_i32_0 : i32, i32
  }
  func.func @transform_5(%arg0: i32, %arg1: i32) -> (i32, i32) {
    %c0_i32 = arith.constant 0 : i32
    %c0_i32_0 = arith.constant 0 : i32
    %c0_i32_1 = arith.constant 0 : i32
    return %c0_i32, %c0_i32_0 : i32, i32
  }
  func.func @transform_6(%arg0: i32, %arg1: i32) -> (i32, i32) {
    %c0_i32 = arith.constant 0 : i32
    %c0_i32_0 = arith.constant 0 : i32
    return %arg0, %c0_i32 : i32, i32
  }
}

</mosaic_0001>

<bundles_post_ra>
// kernel: tpu_custom_call.1
= control target key start
LH: loop header
LB: loop body
LE: loop exit
PB: predicated region body
PF: predicated region fallthrough
CT: control target
= control target key end

     0   :  { %11 = vsyncpa [#allocation4], 0  ;;  %s2751_s0 = inlined_call_operand.hbm [shape: s8[256,256], index: 0, kind: input, shape index: {}]   ;;  %s2752_s1 = inlined_call_operand.hbm [shape: bf16[256,128], index: 1, kind: input, shape index: {}]   ;;  %s2753_s2 = inlined_call_operand.hbm [shape: bf16[128,256], index: 2, kind: input, shape index: {}]   ;;  %s2754_s3 = inlined_call_operand.vmem [shape: f32[1,256], index: 3, kind: input, shape index: {}]   ;;  %s2755_s4 = inlined_call_operand.hbm [shape: bf16[256,128], index: 4, kind: input, shape index: {}]   ;;  %s2756_s5 = inlined_call_operand.vmem [shape: f32[1,128], index: 5, kind: input, shape index: {}]   ;;  %s2757_s6 = inlined_call_operand.hbm [shape: f32[256,128], index: 6, kind: output, shape index: {}]  }
   0x1   :  { %12 = vsyncpa [#allocation7], 0 }
   0x2   :  { %13 = vsyncpa [#allocation10], 0  ;;  %s32_s23 = sshll.u32 %s2752_s1, 4  ;;  %s33_s23 = int_to_ptr.hbm [resolvable:$true] %s32_s23 }
   0x3   :  { %14 = vsyncpa [#allocation5], 0  ;;  %s2387_s24 = smov [#allocation6]   ;;  %s19_s28 = sshll.u32 %s2751_s0, 4  ;;  %s20_s28 = int_to_ptr.hbm [resolvable:$true] %s19_s28 }
   0x4   :  { %s34_s25 = sshll.u32 %s2387_s24, 4  ;;  %s2388_s29 = smov 64   ;;  %s35_s25 = int_to_ptr.vmem [resolvable:$true] %s34_s25 }
   0x5   :  { %s2389_s30 = smov 4   ;;  %s2390_s7 = smov [#allocation3]  }
   0x6   :  { %40 = dma.hbm_to_vmem [thread:$0]  %s33_s23, 2048, %s35_s25, [#allocation7], %s2388_s29, %s2388_s29, %s2389_s30  }
   0x7   :  { %s21_s8 = sshll.u32 %s2390_s7, 4  ;;  %s2391_s9 = smov 256   ;;  %s22_s8 = int_to_ptr.vmem [resolvable:$true] %s21_s8 }
   0x8   :  { %s2392_s10 = smov 16   ;;  %s45_s12 = sshll.u32 %s2753_s2, 4  ;;  %s46_s12 = int_to_ptr.hbm [resolvable:$true] %s45_s12 }
   0x9   :  { %27 = dma.hbm_to_vmem [thread:$0]  %s20_s28, 2048, %s22_s8, [#allocation4], %s2391_s9, %s2391_s9, %s2392_s10  }
   0xa   :  { %s2393_s13 = smov [#allocation8]   ;;  %s60_s16 = sshll.u32 %s2755_s4, 4  ;;  %s61_s16 = int_to_ptr.hbm [resolvable:$true] %s60_s16 }
   0xb   :  { %s47_s14 = sshll.u32 %s2393_s13, 4  ;;  %s2394_s17 = smov 128   ;;  %s48_s14 = int_to_ptr.vmem [resolvable:$true] %s47_s14 }
   0xc   :  { %s2395_s18 = smov 8   ;;  %s2396_s19 = smov [#allocation9]  }
   0xd   :  { %53 = dma.hbm_to_vmem [thread:$0]  %s46_s12, 2048, %s48_s14, [#allocation7], %s2394_s17, %s2394_s17, %s2395_s18  }
   0xe   :  { %s62_s20 = sshll.u32 %s2396_s19, 4  ;;  %s63_s20 = int_to_ptr.vmem [resolvable:$true] %s62_s20 }
   0xf   :  { %68 = dma.hbm_to_vmem [thread:$0]  %s61_s16, 2048, %s63_s20, [#allocation10], %s2388_s29, %s2388_s29, %s2389_s30  }
  0x10   :  { %2379 = dma.done.wait [#allocation4], 2048  }
  0x11   :  { %2380 = vsyncadd [#allocation4], 4294965248 }
  0x12   :  { %2381 = dma.done.wait [#allocation7], 4096  }
  0x13   :  { %2382 = vsyncadd [#allocation7], 4294963200 }
  0x14   :  { %2383 = dma.done.wait [#allocation10], 2048  }
  0x15   :  { %2384 = vsyncadd [#allocation10], 4294965248  ;;  %v131_v0 = vld [vmem:[#allocation3 + $0x40] sm:$0xff]  ;;  %v132_v1 = vld [vmem:[#allocation3 + $0x48] sm:$0xff]  ;;  %s1780_s25 = sshll.u32 %s2757_s6, 4  ;;  %s1781_s25 = int_to_ptr.hbm [resolvable:$true] %s1780_s25 }
  0x16   :  { %v123_v2 = vld [vmem:[#allocation3] sm:$0xff]  ;;  %v171_v3 = vunpack.c.0.s8 %v131_v0  ;;  %v172_v4 = vunpack.c.0.s8 %v132_v1  ;;  %v173_v5 = vunpack.c.1.s8 %v131_v0  ;;  %v174_v6 = vunpack.c.1.s8 %v132_v1  ;;  %v124_v7 = vld [vmem:[#allocation3 + $0x8] sm:$0xff]  ;;  %v133_v44 = vld [vmem:[#allocation3 + $0x50] sm:$0xff] }
  0x17   :  { %v139_v8 = vunpack.c.0.s8 %v123_v2  ;;  %v140_v9 = vunpack.c.0.s8 %v124_v7  ;;  %v141_v10 = vunpack.c.1.s8 %v123_v2  ;;  %v142_v11 = vunpack.c.1.s8 %v124_v7  ;;  %v134_v45 = vld [vmem:[#allocation3 + $0x58] sm:$0xff]  ;;  %v125_v46 = vld [vmem:[#allocation3 + $0x10] sm:$0xff] }
  0x18   :  { %v235_v12 = vcvt.s32.f32 %v171_v3  ;;  %v236_v13 = vcvt.s32.f32 %v172_v4  ;;  %v237_v14 = vcvt.s32.f32 %v173_v5  ;;  %v238_v15 = vcvt.s32.f32 %v174_v6  ;;  %v126_v47 = vld [vmem:[#allocation3 + $0x18] sm:$0xff] }
  0x19   :  { %v203_v16 = vcvt.s32.f32 %v139_v8  ;;  %v204_v17 = vcvt.s32.f32 %v140_v9  ;;  %v205_v18 = vcvt.s32.f32 %v141_v10  ;;  %v206_v19 = vcvt.s32.f32 %v142_v11 }
  0x1a   :  { %v283_v20 = vpack.c.bf16 %v237_v14, %v235_v12  ;;  %v284_v21 = vpack.c.bf16 %v238_v15, %v236_v13  ;;  %v175_v24 = vunpack.c.2.s8 %v131_v0  ;;  %v176_v25 = vunpack.c.2.s8 %v132_v1 }
  0x1b   :  { %v267_v22 = vpack.c.bf16 %v205_v18, %v203_v16  ;;  %v268_v23 = vpack.c.bf16 %v206_v19, %v204_v17  ;;  %v177_v26 = vunpack.c.3.s8 %v131_v0  ;;  %v178_v27 = vunpack.c.3.s8 %v132_v1 }
  0x1c   :  { %387 = vxpose.binary.xlu1.c.b16.start [1/16] %v284_v21, %v283_v20, 128  ;;  %v143_v28 = vunpack.c.2.s8 %v123_v2  ;;  %v144_v29 = vunpack.c.2.s8 %v124_v7  ;;  %v145_v30 = vunpack.c.3.s8 %v123_v2  ;;  %v146_v31 = vunpack.c.3.s8 %v124_v7 }
  0x1d   :  { %363 = vxpose.binary.xlu0.c.b16.start [1/16] %v268_v23, %v267_v22, 128  ;;  %v239_v32 = vcvt.s32.f32 %v175_v24  ;;  %v240_v33 = vcvt.s32.f32 %v176_v25  ;;  %v241_v34 = vcvt.s32.f32 %v177_v26  ;;  %v242_v35 = vcvt.s32.f32 %v178_v27  ;;  %v135_v24 = vld [vmem:[#allocation3 + $0x60] sm:$0xff]  ;;  %v136_v25 = vld [vmem:[#allocation3 + $0x68] sm:$0xff] }
  0x1e   :  { %v207_v36 = vcvt.s32.f32 %v143_v28  ;;  %v208_v37 = vcvt.s32.f32 %v144_v29  ;;  %v209_v38 = vcvt.s32.f32 %v145_v30  ;;  %v210_v39 = vcvt.s32.f32 %v146_v31  ;;  %v127_v26 = vld [vmem:[#allocation3 + $0x20] sm:$0xff]  ;;  %v128_v27 = vld [vmem:[#allocation3 + $0x28] sm:$0xff] }
  0x1f   :  { %v285_v40 = vpack.c.bf16 %v241_v34, %v239_v32  ;;  %v286_v41 = vpack.c.bf16 %v242_v35, %v240_v33  ;;  %v179_v48 = vunpack.c.0.s8 %v133_v44  ;;  %v180_v49 = vunpack.c.0.s8 %v134_v45 }
  0x20   :  { %v269_v42 = vpack.c.bf16 %v209_v38, %v207_v36  ;;  %v270_v43 = vpack.c.bf16 %v210_v39, %v208_v37  ;;  %v181_v50 = vunpack.c.1.s8 %v133_v44  ;;  %v182_v51 = vunpack.c.1.s8 %v134_v45 }
  0x21   :  { %v147_v52 = vunpack.c.0.s8 %v125_v46  ;;  %v148_v53 = vunpack.c.0.s8 %v126_v47  ;;  %v149_v54 = vunpack.c.1.s8 %v125_v46  ;;  %v150_v55 = vunpack.c.1.s8 %v126_v47 }
  0x22   :  { %v243_v56 = vcvt.s32.f32 %v179_v48  ;;  %v244_v57 = vcvt.s32.f32 %v180_v49  ;;  %v245_v58 = vcvt.s32.f32 %v181_v50  ;;  %v246_v59 = vcvt.s32.f32 %v182_v51 }
  0x23   :  { %v211_v60 = vcvt.s32.f32 %v147_v52  ;;  %v212_v61 = vcvt.s32.f32 %v148_v53  ;;  %v213_v62 = vcvt.s32.f32 %v149_v54  ;;  %v214_v63 = vcvt.s32.f32 %v150_v55 }
  0x24   :  { %v287_v0 = vpack.c.bf16 %v245_v58, %v243_v56  ;;  %v288_v1 = vpack.c.bf16 %v246_v59, %v244_v57  ;;  %v183_v4 = vunpack.c.2.s8 %v133_v44  ;;  %v184_v5 = vunpack.c.2.s8 %v134_v45 }
  0x25   :  { %v271_v2 = vpack.c.bf16 %v213_v62, %v211_v60  ;;  %v272_v3 = vpack.c.bf16 %v214_v63, %v212_v61  ;;  %v185_v6 = vunpack.c.3.s8 %v133_v44  ;;  %v186_v7 = vunpack.c.3.s8 %v134_v45 }
  0x26   :  { %v151_v8 = vunpack.c.2.s8 %v125_v46  ;;  %v152_v9 = vunpack.c.2.s8 %v126_v47  ;;  %v153_v10 = vunpack.c.3.s8 %v125_v46  ;;  %v154_v11 = vunpack.c.3.s8 %v126_v47 }
  0x27   :  { %v247_v12 = vcvt.s32.f32 %v183_v4  ;;  %v248_v13 = vcvt.s32.f32 %v184_v5  ;;  %v249_v14 = vcvt.s32.f32 %v185_v6  ;;  %v250_v15 = vcvt.s32.f32 %v186_v7  ;;  %v2449_v4 = vld [vmem:[#allocation3 + $0x70] sm:$0xff]  ;;  %v2451_v5 = vld [vmem:[#allocation3 + $0x78] sm:$0xff] }
  0x28   :  { %v215_v16 = vcvt.s32.f32 %v151_v8  ;;  %v216_v17 = vcvt.s32.f32 %v152_v9  ;;  %v217_v18 = vcvt.s32.f32 %v153_v10  ;;  %v218_v19 = vcvt.s32.f32 %v154_v11  ;;  %v1994_v6 = vld [vmem:[#allocation6 + $0x38] sm:$0xff]  ;;  %v2453_v8 = vld [vmem:[#allocation3 + $0x30] sm:$0xff] }
  0x29   :  { %v289_v20 = vpack.c.bf16 %v249_v14, %v247_v12  ;;  %v290_v21 = vpack.c.bf16 %v250_v15, %v248_v13  ;;  %v187_v28 = vunpack.c.0.s8 %v135_v24  ;;  %v188_v29 = vunpack.c.0.s8 %v136_v25  ;;  %v2002_v7 = vld [vmem:[#allocation6 + $0x78] sm:$0xff]  ;;  %507 = vmatpush.bf16.msra.mxu0 %v1994_v6  ;;  %v1993_v10 = vld [vmem:[#allocation6 + $0x30] sm:$0xff]  ;;  %2035 = vmatpush.bf16.msra.mxu2 %v1994_v6 }
  0x2a   :  { %v273_v22 = vpack.c.bf16 %v217_v18, %v215_v16  ;;  %v274_v23 = vpack.c.bf16 %v218_v19, %v216_v17  ;;  %v189_v30 = vunpack.c.1.s8 %v135_v24  ;;  %v190_v31 = vunpack.c.1.s8 %v136_v25  ;;  %v2455_v9 = vld [vmem:[#allocation3 + $0x38] sm:$0xff]  ;;  %596 = vmatpush.bf16.msra.mxu1 %v2002_v7  ;;  %v2001_v11 = vld [vmem:[#allocation6 + $0x70] sm:$0xff]  ;;  %2043 = vmatpush.bf16.msra.mxu3 %v2002_v7 }
  0x2b   :  { %v155_v32 = vunpack.c.0.s8 %v127_v26  ;;  %v156_v33 = vunpack.c.0.s8 %v128_v27  ;;  %v157_v34 = vunpack.c.1.s8 %v127_v26  ;;  %v158_v35 = vunpack.c.1.s8 %v128_v27 }
  0x2c   :  { %388 = vxpose.binary.xlu1.c.b16.cont [2/16] %v286_v41, %v285_v40, 128  ;;  %v251_v36 = vcvt.s32.f32 %v187_v28  ;;  %v252_v37 = vcvt.s32.f32 %v188_v29  ;;  %v253_v38 = vcvt.s32.f32 %v189_v30  ;;  %v254_v39 = vcvt.s32.f32 %v190_v31  ;;  %v1991_v30 = vld [vmem:[#allocation6 + $0x20] sm:$0xff] }
  0x2d   :  { %364 = vxpose.binary.xlu0.c.b16.cont [2/16] %v270_v43, %v269_v42, 128  ;;  %v219_v40 = vcvt.s32.f32 %v155_v32  ;;  %v220_v41 = vcvt.s32.f32 %v156_v33  ;;  %v221_v42 = vcvt.s32.f32 %v157_v34  ;;  %v222_v43 = vcvt.s32.f32 %v158_v35  ;;  %v1999_v31 = vld [vmem:[#allocation6 + $0x60] sm:$0xff] }
  0x2e   :  { %v291_v44 = vpack.c.bf16 %v253_v38, %v251_v36  ;;  %v292_v45 = vpack.c.bf16 %v254_v39, %v252_v37  ;;  %v191_v48 = vunpack.c.2.s8 %v135_v24  ;;  %v192_v49 = vunpack.c.2.s8 %v136_v25  ;;  %508 = vmatpush.bf16.msra.mxu0 %v1993_v10  ;;  %597 = vmatpush.bf16.msra.mxu1 %v2001_v11  ;;  %v1990_v36 = vld [vmem:[#allocation6 + $0x18] sm:$0xff]  ;;  %v1989_v38 = vld [vmem:[#allocation6 + $0x10] sm:$0xff] }
  0x2f   :  { %v275_v46 = vpack.c.bf16 %v221_v42, %v219_v40  ;;  %v276_v47 = vpack.c.bf16 %v222_v43, %v220_v41  ;;  %v193_v50 = vunpack.c.3.s8 %v135_v24  ;;  %v194_v51 = vunpack.c.3.s8 %v136_v25  ;;  %2036 = vmatpush.bf16.msra.mxu2 %v1993_v10  ;;  %2044 = vmatpush.bf16.msra.mxu3 %v2001_v11  ;;  %v1998_v37 = vld [vmem:[#allocation6 + $0x58] sm:$0xff]  ;;  %v1997_v39 = vld [vmem:[#allocation6 + $0x50] sm:$0xff] }
  0x30   :  { %v159_v52 = vunpack.c.2.s8 %v127_v26  ;;  %v160_v53 = vunpack.c.2.s8 %v128_v27  ;;  %v161_v54 = vunpack.c.3.s8 %v127_v26  ;;  %v162_v55 = vunpack.c.3.s8 %v128_v27 }
  0x31   :  { %v255_v56 = vcvt.s32.f32 %v191_v48  ;;  %v256_v57 = vcvt.s32.f32 %v192_v49  ;;  %v257_v58 = vcvt.s32.f32 %v193_v50  ;;  %v258_v59 = vcvt.s32.f32 %v194_v51  ;;  %v1988_v48 = vld [vmem:[#allocation6 + $0x8] sm:$0xff] }
  0x32   :  { %v223_v60 = vcvt.s32.f32 %v159_v52  ;;  %v224_v61 = vcvt.s32.f32 %v160_v53  ;;  %v225_v62 = vcvt.s32.f32 %v161_v54  ;;  %v226_v63 = vcvt.s32.f32 %v162_v55  ;;  %v1996_v49 = vld [vmem:[#allocation6 + $0x48] sm:$0xff] }
  0x33   :  { %v195_v12 = vunpack.c.0.s8 %v2449_v4  ;;  %v196_v13 = vunpack.c.0.s8 %v2451_v5  ;;  %v197_v14 = vunpack.c.1.s8 %v2449_v4  ;;  %v198_v15 = vunpack.c.1.s8 %v2451_v5 }
  0x34   :  { %v163_v16 = vunpack.c.0.s8 %v2453_v8  ;;  %v164_v17 = vunpack.c.0.s8 %v2455_v9  ;;  %v165_v18 = vunpack.c.1.s8 %v2453_v8  ;;  %v166_v19 = vunpack.c.1.s8 %v2455_v9 }
  0x35   :  { %v261_v24 = vcvt.s32.f32 %v197_v14  ;;  %v262_v25 = vcvt.s32.f32 %v198_v15  ;;  %v199_v40 = vunpack.c.2.s8 %v2449_v4  ;;  %v200_v41 = vunpack.c.2.s8 %v2451_v5 }
  0x36   :  { %v227_v26 = vcvt.s32.f32 %v163_v16  ;;  %v228_v27 = vcvt.s32.f32 %v164_v17  ;;  %v229_v28 = vcvt.s32.f32 %v165_v18  ;;  %v230_v29 = vcvt.s32.f32 %v166_v19 }
  0x37   :  { %v201_v42 = vunpack.c.3.s8 %v2449_v4  ;;  %v202_v43 = vunpack.c.3.s8 %v2451_v5  ;;  %v263_v50 = vcvt.s32.f32 %v199_v40  ;;  %v264_v51 = vcvt.s32.f32 %v200_v41  ;;  %v2016_v40 = vld [vmem:[#allocation8 + $0x64] sm:$0xf0]  ;;  %v2015_v41 = vld [vmem:[#allocation8 + $0x64] sm:$0xf] }
  0x38   :  { %v279_v34 = vpack.c.bf16 %v229_v28, %v227_v26  ;;  %v280_v35 = vpack.c.bf16 %v230_v29, %v228_v27  ;;  %v2397_v28 = vmov 64   ;;  %v1917_v29 = vld [vmem:[#allocation8 + $0x70] sm:$0xf] }
  0x39   :  { %v265_v52 = vcvt.s32.f32 %v201_v42  ;;  %v266_v53 = vcvt.s32.f32 %v202_v43  ;;  %2063 = vset.pattern.permute.xlu2 %v2397_v28  ;;  %v1911_v43 = vld [vmem:[#allocation8 + $0x68] sm:$0xf0] }
  0x3c   :  { %389 = vxpose.binary.xlu1.c.b16.cont [3/16] %v288_v1, %v287_v0, 128  ;;  %v293_v0 = vpack.c.bf16 %v257_v58, %v255_v56  ;;  %v294_v1 = vpack.c.bf16 %v258_v59, %v256_v57  ;;  %v1987_v58 = vld [vmem:[#allocation6] sm:$0xff] }
  0x3d   :  { %365 = vxpose.binary.xlu0.c.b16.cont [3/16] %v272_v3, %v271_v2, 128  ;;  %v277_v2 = vpack.c.bf16 %v225_v62, %v223_v60  ;;  %v278_v3 = vpack.c.bf16 %v226_v63, %v224_v61  ;;  %v1995_v59 = vld [vmem:[#allocation6 + $0x40] sm:$0xff]  ;;  %v297_v60 = vpack.c.bf16 %v265_v52, %v263_v50 }
  0x3e   :  { %v298_v61 = vpack.c.bf16 %v266_v53, %v264_v51 }
  0x4c   :  { %390 = vxpose.binary.xlu1.c.b16.cont [4/16] %v290_v21, %v289_v20, 128  ;;  %v1992_v20 = vld [vmem:[#allocation6 + $0x28] sm:$0xff] }
  0x4d   :  { %366 = vxpose.binary.xlu0.c.b16.cont [4/16] %v274_v23, %v273_v22, 128  ;;  %v2000_v21 = vld [vmem:[#allocation6 + $0x68] sm:$0xff]  ;;  %v259_v22 = vcvt.s32.f32 %v195_v12  ;;  %v260_v23 = vcvt.s32.f32 %v196_v13 }
  0x4e   :  { %509 = vmatpush.bf16.msra.mxu0 %v1992_v20  ;;  %598 = vmatpush.bf16.msra.mxu1 %v2000_v21 }
  0x4f   :  { %v295_v32 = vpack.c.bf16 %v261_v24, %v259_v22  ;;  %v296_v33 = vpack.c.bf16 %v262_v25, %v260_v23  ;;  %2037 = vmatpush.bf16.msra.mxu2 %v1992_v20  ;;  %2045 = vmatpush.bf16.msra.mxu3 %v2000_v21 }
  0x52   :  { %510 = vmatpush.bf16.msra.mxu0 %v1991_v30  ;;  %599 = vmatpush.bf16.msra.mxu1 %v1999_v31 }
  0x53   :  { %2038 = vmatpush.bf16.msra.mxu2 %v1991_v30  ;;  %2046 = vmatpush.bf16.msra.mxu3 %v1999_v31  ;;  %v2018_v30 = vld [vmem:[#allocation8 + $0x74] sm:$0xf0]  ;;  %v2017_v31 = vld [vmem:[#allocation8 + $0x74] sm:$0xf] }
  0x56   :  { %511 = vmatpush.bf16.msra.mxu0 %v1990_v36  ;;  %600 = vmatpush.bf16.msra.mxu1 %v1998_v37 }
  0x57   :  { %2039 = vmatpush.bf16.msra.mxu2 %v1990_v36  ;;  %2047 = vmatpush.bf16.msra.mxu3 %v1998_v37 }
  0x5a   :  { %512 = vmatpush.bf16.msra.mxu0 %v1989_v38  ;;  %601 = vmatpush.bf16.msra.mxu1 %v1997_v39 }
  0x5b   :  { %2040 = vmatpush.bf16.msra.mxu2 %v1989_v38  ;;  %2048 = vmatpush.bf16.msra.mxu3 %v1997_v39  ;;  %v1909_v39 = vld [vmem:[#allocation8 + $0x60] sm:$0xf] }
  0x5c   :  { %391 = vxpose.binary.xlu1.c.b16.cont [5/16] %v292_v45, %v291_v44, 128  ;;  %v167_v44 = vunpack.c.2.s8 %v2453_v8  ;;  %v168_v45 = vunpack.c.2.s8 %v2455_v9  ;;  %v1910_v42 = vor.u32 %v2016_v40, %v1909_v39  ;;  %v1887_v40 = vld [vmem:[#allocation8 + $0x38] sm:$0xf0] }
  0x5d   :  { %367 = vxpose.binary.xlu0.c.b16.cont [5/16] %v276_v47, %v275_v46, 128  ;;  %v169_v46 = vunpack.c.3.s8 %v2453_v8  ;;  %v170_v47 = vunpack.c.3.s8 %v2455_v9 }
  0x5e   :  { %v231_v54 = vcvt.s32.f32 %v167_v44  ;;  %v232_v55 = vcvt.s32.f32 %v168_v45  ;;  %513 = vmatpush.bf16.msra.mxu0 %v1988_v48  ;;  %602 = vmatpush.bf16.msra.mxu1 %v1996_v49  ;;  %v1914_v45 = vor.u32 %v2015_v41, %v1911_v43 }
  0x5f   :  { %v233_v56 = vcvt.s32.f32 %v169_v46  ;;  %v234_v57 = vcvt.s32.f32 %v170_v47  ;;  %2041 = vmatpush.bf16.msra.mxu2 %v1988_v48  ;;  %2049 = vmatpush.bf16.msra.mxu3 %v1996_v49 }
  0x61   :  { %v281_v62 = vpack.c.bf16 %v233_v56, %v231_v54  ;;  %v282_v63 = vpack.c.bf16 %v234_v57, %v232_v55  ;;  %v1901_v55 = vld [vmem:[#allocation8 + $0x50] sm:$0xf]  ;;  %v2014_v56 = vld [vmem:[#allocation8 + $0x54] sm:$0xf0]  ;;  %v2013_v57 = vld [vmem:[#allocation8 + $0x54] sm:$0xf] }
  0x62   :  { %514 = vmatpush.bf16.msra.mxu0 %v1987_v58  ;;  %603 = vmatpush.bf16.msra.mxu1 %v1995_v59 }
  0x63   :  { %2042 = vmatpush.bf16.msra.mxu2 %v1987_v58  ;;  %2050 = vmatpush.bf16.msra.mxu3 %v1995_v59  ;;  %v1902_v59 = vor.u32 %v2014_v56, %v1901_v55 }
  0x6c   :  { %392 = vxpose.binary.xlu1.c.b16.cont [6/16] %v294_v1, %v293_v0, 128 }
  0x6d   :  { %368 = vxpose.binary.xlu0.c.b16.cont [6/16] %v278_v3, %v277_v2, 128 }
  0x7c   :  { %393 = vxpose.binary.xlu1.c.b16.cont [7/16] %v296_v33, %v295_v32, 128  ;;  %v1918_v32 = vor.u32 %v2018_v30, %v1917_v29  ;;  %v1919_v33 = vld [vmem:[#allocation8 + $0x78] sm:$0xf0] }
  0x7d   :  { %369 = vxpose.binary.xlu0.c.b16.cont [7/16] %v280_v35, %v279_v34, 128  ;;  %v1922_v34 = vor.u32 %v2017_v31, %v1919_v33 }
  0x7e   :  { %1158 = vmatpush.bf16.msrb.mxu2 %v1918_v32 }
  0x7f   :  { %1247 = vmatpush.bf16.msrb.mxu3 %v1922_v34 }
  0x82   :  { %1159 = vmatpush.bf16.msrb.mxu2 %v1910_v42 }
  0x83   :  { %1248 = vmatpush.bf16.msrb.mxu3 %v1914_v45 }
  0x86   :  { %1160 = vmatpush.bf16.msrb.mxu2 %v1902_v59  ;;  %v2008_v59 = vld [vmem:[#allocation8 + $0x24] sm:$0xf0] }
  0x8c   :  { %394 = vxpose.binary.xlu1.c.b16.end [8/16] %v298_v61, %v297_v60, 128  ;;  %v1903_v60 = vld [vmem:[#allocation8 + $0x58] sm:$0xf0] }
  0x8d   :  { %370 = vxpose.binary.xlu0.c.b16.end [8/16] %v282_v63, %v281_v62, 128  ;;  %v1906_v63 = vor.u32 %v2013_v57, %v1903_v60  ;;  %v2007_v60 = vld [vmem:[#allocation8 + $0x24] sm:$0xf] }
  0x8f   :  { %1249 = vmatpush.bf16.msrb.mxu3 %v1906_v63 }
  0xc8   :  { %v395_v0 = vpop.trf.xlu1 }
  0xc9   :  { %v371_v1 = vpop.trf.xlu0  ;;  %604 = vmatmul.bf16.vlgmr.msra.gmra.mxu1 %v395_v0 }
  0xca   :  { %515 = vmatmul.bf16.vlgmr.msra.gmra.mxu0 %v371_v1 }
  0xd0   :  { %v396_v2 = vpop.trf.xlu1 }
  0xd1   :  { %v372_v3 = vpop.trf.xlu0  ;;  %644 = vmatmul.bf16.vlgmr.msra.gmra.mxu3 %v396_v2 }
  0xd2   :  { %555 = vmatmul.bf16.vlgmr.msra.gmra.mxu2 %v372_v3 }
  0xd8   :  { %v397_v4 = vpop.trf.xlu1 }
  0xd9   :  { %v373_v5 = vpop.trf.xlu0  ;;  %609 = vmatmul.bf16.gmra.mxu1 %v397_v4 }
  0xda   :  { %520 = vmatmul.bf16.gmra.mxu0 %v373_v5 }
  0xdf   :  { %2065 = vset.pattern.permute.xlu1 %v2397_v28 }
  0xe0   :  { %v398_v6 = vpop.trf.xlu1 }
  0xe1   :  { %v374_v7 = vpop.trf.xlu0  ;;  %649 = vmatmul.bf16.gmra.mxu3 %v398_v6 }
  0xe2   :  { %560 = vmatmul.bf16.gmra.mxu2 %v374_v7 }
  0xe8   :  { %v399_v8 = vpop.trf.xlu1 }
  0xe9   :  { %v375_v9 = vpop.trf.xlu0  ;;  %614 = vmatmul.bf16.gmra.mxu1 %v399_v8 }
  0xea   :  { %525 = vmatmul.bf16.gmra.mxu0 %v375_v9 }
  0xf0   :  { %v400_v10 = vpop.trf.xlu1 }
  0xf1   :  { %v376_v11 = vpop.trf.xlu0  ;;  %654 = vmatmul.bf16.gmra.mxu3 %v400_v10 }
  0xf2   :  { %565 = vmatmul.bf16.gmra.mxu2 %v376_v11 }
  0xf4   :  { %2064 = vset.pattern.permute.xlu0 %v2397_v28 }
  0xf8   :  { %v401_v12 = vpop.trf.xlu1 }
  0xf9   :  { %v377_v13 = vpop.trf.xlu0  ;;  %619 = vmatmul.bf16.gmra.mxu1 %v401_v12 }
  0xfa   :  { %530 = vmatmul.bf16.gmra.mxu0 %v377_v13 }
 0x100   :  { %v402_v14 = vpop.trf.xlu1 }
 0x101   :  { %v378_v15 = vpop.trf.xlu0  ;;  %659 = vmatmul.bf16.gmra.mxu3 %v402_v14  ;;  %v1893_v14 = vld [vmem:[#allocation8 + $0x40] sm:$0xf] }
 0x102   :  { %570 = vmatmul.bf16.gmra.mxu2 %v378_v15  ;;  %v2012_v15 = vld [vmem:[#allocation8 + $0x44] sm:$0xf0] }
 0x108   :  { %v403_v16 = vpop.trf.xlu1 }
 0x109   :  { %v379_v17 = vpop.trf.xlu0  ;;  %624 = vmatmul.bf16.gmra.mxu1 %v403_v16  ;;  %v2011_v16 = vld [vmem:[#allocation8 + $0x44] sm:$0xf] }
 0x10a   :  { %535 = vmatmul.bf16.gmra.mxu0 %v379_v17 }
 0x110   :  { %v404_v18 = vpop.trf.xlu1 }
 0x111   :  { %v380_v19 = vpop.trf.xlu0  ;;  %664 = vmatmul.bf16.gmra.mxu3 %v404_v18  ;;  %v1894_v18 = vor.u32 %v2012_v15, %v1893_v14 }
 0x112   :  { %575 = vmatmul.bf16.gmra.mxu2 %v380_v19  ;;  %v1895_v19 = vld [vmem:[#allocation8 + $0x48] sm:$0xf0] }
 0x113   :  { %1161 = vmatpush.bf16.msrb.mxu2 %v1894_v18  ;;  %v2006_v18 = vld [vmem:[#allocation8 + $0x14] sm:$0xf0] }
 0x118   :  { %v405_v20 = vpop.trf.xlu1 }
 0x119   :  { %v381_v21 = vpop.trf.xlu0  ;;  %629 = vmatmul.bf16.gmra.mxu1 %v405_v20 }
 0x11a   :  { %540 = vmatmul.bf16.gmra.mxu0 %v381_v21 }
 0x120   :  { %v406_v22 = vpop.trf.xlu1 }
 0x121   :  { %v382_v23 = vpop.trf.xlu0  ;;  %669 = vmatmul.bf16.gmra.mxu3 %v406_v22  ;;  %v1898_v22 = vor.u32 %v2011_v16, %v1895_v19 }
 0x122   :  { %580 = vmatmul.bf16.gmra.mxu2 %v382_v23 }
 0x123   :  { %1250 = vmatpush.bf16.msrb.mxu3 %v1898_v22  ;;  %v1871_v22 = vld [vmem:[#allocation8 + $0x18] sm:$0xf0] }
 0x128   :  { %v407_v24 = vpop.trf.xlu1 }
 0x129   :  { %v383_v25 = vpop.trf.xlu0  ;;  %634 = vmatmul.bf16.gmra.mxu1 %v407_v24 }
 0x12a   :  { %545 = vmatmul.bf16.gmra.mxu0 %v383_v25 }
 0x130   :  { %v408_v26 = vpop.trf.xlu1 }
 0x131   :  { %v384_v27 = vpop.trf.xlu0  ;;  %674 = vmatmul.bf16.gmra.mxu3 %v408_v26 }
 0x132   :  { %585 = vmatmul.bf16.gmra.mxu2 %v384_v27 }
 0x138   :  { %v409_v35 = vpop.trf.xlu1 }
 0x139   :  { %v385_v36 = vpop.trf.xlu0  ;;  %639 = vmatmul.bf16.gmra.mxu1 %v409_v35  ;;  %v1885_v35 = vld [vmem:[#allocation8 + $0x30] sm:$0xf] }
 0x13a   :  { %550 = vmatmul.bf16.gmra.mxu0 %v385_v36  ;;  %v2010_v36 = vld [vmem:[#allocation8 + $0x34] sm:$0xf0] }
 0x13b   :  { %v1886_v39 = vor.u32 %v2010_v36, %v1885_v35  ;;  %v1863_v36 = vld [vmem:[#allocation8 + $0x8] sm:$0xf0] }
 0x13d   :  { %1162 = vmatpush.bf16.msrb.mxu2 %v1886_v39 }
 0x140   :  { %v410_v37 = vpop.trf.xlu1 }
 0x141   :  { %v386_v38 = vpop.trf.xlu0  ;;  %679 = vmatmul.bf16.gmra.mxu3 %v410_v37  ;;  %v2009_v37 = vld [vmem:[#allocation8 + $0x34] sm:$0xf] }
 0x142   :  { %590 = vmatmul.bf16.gmra.mxu2 %v386_v38  ;;  %v1890_v43 = vor.u32 %v2009_v37, %v1887_v40 }
 0x144   :  { %1251 = vmatpush.bf16.msrb.mxu3 %v1890_v43 }
 0x146   :  { %v605_v44 = vpop.f32.mrf.mxu1 }
 0x147   :  { %v516_v46 = vpop.f32.mrf.mxu0 }
 0x148   :  { %v2473_v47 = vadd.f32 %v605_v44, %v516_v46 }
 0x14a   :  { %v784_v48 = vadd.f32 1e-08, %v2473_v47 }
 0x14c   :  { %2067 = vrcp.f32 %v784_v48 }
 0x14e   :  { %v607_v49 = vpop.f32.mrf.mxu1 }
 0x14f   :  { %v518_v50 = vpop.f32.mrf.mxu0 }
 0x150   :  { %v2476_v51 = vadd.f32 %v607_v49, %v518_v50 }
 0x152   :  { %v2068_v52 = vpop.eup %2067  ;;  %v785_v53 = vadd.f32 1e-08, %v2476_v51 }
 0x153   :  { %850 = vperm.xlu2 %2063, %v2068_v52  }
 0x154   :  { %2069 = vrcp.f32 %v785_v53  ;;  %v645_v54 = vpop.f32.mrf.mxu3 }
 0x155   :  { %v556_v58 = vpop.f32.mrf.mxu2 }
 0x156   :  { %v2479_v61 = vadd.f32 %v645_v54, %v556_v58  ;;  %v610_v62 = vpop.f32.mrf.mxu1  ;;  %v1877_v58 = vld [vmem:[#allocation8 + $0x20] sm:$0xf] }
 0x157   :  { %v521_v0 = vpop.f32.mrf.mxu0  ;;  %v1878_v63 = vor.u32 %v2008_v59, %v1877_v58 }
 0x158   :  { %v800_v1 = vadd.f32 1e-08, %v2479_v61  ;;  %v2482_v2 = vadd.f32 %v610_v62, %v521_v0  ;;  %v1879_v0 = vld [vmem:[#allocation8 + $0x28] sm:$0xf0] }
 0x159   :  { %1163 = vmatpush.bf16.msrb.mxu2 %v1878_v63 }
 0x15a   :  { %v2070_v3 = vpop.eup %2069  ;;  %2071 = vrcp.f32 %v800_v1  ;;  %v786_v4 = vadd.f32 1e-08, %v2482_v2 }
 0x15b   :  { %855 = vperm.xlu2 %2063, %v2070_v3  }
 0x15c   :  { %2073 = vrcp.f32 %v786_v4  ;;  %v2485_v5 = vpop.f32.mrf.mxu3  ;;  %v1882_v4 = vor.u32 %v2007_v60, %v1879_v0 }
 0x15d   :  { %v2487_v6 = vpop.f32.mrf.mxu2 }
 0x15e   :  { %v612_v7 = vpop.f32.mrf.mxu1  ;;  %1252 = vmatpush.bf16.msrb.mxu3 %v1882_v4 }
 0x15f   :  { %v523_v8 = vpop.f32.mrf.mxu0 }
 0x160   :  { %v2072_v9 = vpop.eup %2071  ;;  %v2489_v10 = vadd.f32 %v612_v7, %v523_v8 }
 0x161   :  { %930 = vperm.xlu1 %2065, %v2072_v9  }
 0x162   :  { %v2074_v11 = vpop.eup %2073  ;;  %v787_v12 = vadd.f32 1e-08, %v2489_v10 }
 0x163   :  { %860 = vperm.xlu2 %2063, %v2074_v11  }
 0x164   :  { %2075 = vrcp.f32 %v787_v12  ;;  %v650_v13 = vpop.f32.mrf.mxu3 }
 0x165   :  { %v561_v17 = vpop.f32.mrf.mxu2 }
 0x166   :  { %v2492_v20 = vadd.f32 %v650_v13, %v561_v17  ;;  %v615_v21 = vpop.f32.mrf.mxu1  ;;  %v1869_v17 = vld [vmem:[#allocation8 + $0x10] sm:$0xf] }
 0x167   :  { %v526_v23 = vpop.f32.mrf.mxu0  ;;  %v1870_v19 = vor.u32 %v2006_v18, %v1869_v17 }
 0x168   :  { %v2494_v24 = vadd.f32 %v615_v21, %v526_v23  ;;  %v2005_v21 = vld [vmem:[#allocation8 + $0x14] sm:$0xf] }
 0x169   :  { %1164 = vmatpush.bf16.msrb.mxu2 %v1870_v19 }
 0x16a   :  { %v2076_v25 = vpop.eup %2075  ;;  %v788_v26 = vadd.f32 1e-08, %v2494_v24 }
 0x16b   :  { %865 = vperm.xlu2 %2063, %v2076_v25  }
 0x16c   :  { %2077 = vrcp.f32 %v788_v26  ;;  %v2497_v27 = vpop.f32.mrf.mxu3  ;;  %v1874_v26 = vor.u32 %v2005_v21, %v1871_v22 }
 0x16d   :  { %v2499_v28 = vpop.f32.mrf.mxu2 }
 0x16e   :  { %v617_v29 = vpop.f32.mrf.mxu1  ;;  %1253 = vmatpush.bf16.msrb.mxu3 %v1874_v26 }
 0x16f   :  { %v528_v30 = vpop.f32.mrf.mxu0 }
 0x170   :  { %v2501_v31 = vadd.f32 %v617_v29, %v528_v30  ;;  %v1861_v30 = vld [vmem:[#allocation8] sm:$0xf] }
 0x172   :  { %v2078_v32 = vpop.eup %2077  ;;  %v789_v33 = vadd.f32 1e-08, %v2501_v31 }
 0x173   :  { %870 = vperm.xlu2 %2063, %v2078_v32   ;;  %v2004_v32 = vld [vmem:[#allocation8 + $0x4] sm:$0xf0] }
 0x174   :  { %2079 = vrcp.f32 %v789_v33  ;;  %v655_v34 = vpop.f32.mrf.mxu3  ;;  %v2003_v33 = vld [vmem:[#allocation8 + $0x4] sm:$0xf]  ;;  %v1862_v35 = vor.u32 %v2004_v32, %v1861_v30 }
 0x175   :  { %v566_v38 = vpop.f32.mrf.mxu2  ;;  %v1866_v39 = vor.u32 %v2003_v33, %v1863_v36 }
 0x176   :  { %v2504_v41 = vadd.f32 %v655_v34, %v566_v38  ;;  %v620_v42 = vpop.f32.mrf.mxu1  ;;  %1165 = vmatpush.bf16.msrb.mxu2 %v1862_v35 }
 0x177   :  { %v531_v44 = vpop.f32.mrf.mxu0  ;;  %1254 = vmatpush.bf16.msrb.mxu3 %v1866_v39 }
 0x178   :  { %v2506_v45 = vadd.f32 %v620_v42, %v531_v44 }
 0x17a   :  { %v2080_v46 = vpop.eup %2079  ;;  %v790_v48 = vadd.f32 1e-08, %v2506_v45 }
 0x17b   :  { %875 = vperm.xlu2 %2063, %v2080_v46  }
 0x17c   :  { %2081 = vrcp.f32 %v790_v48  ;;  %v2509_v49 = vpop.f32.mrf.mxu3 }
 0x17d   :  { %v2511_v50 = vpop.f32.mrf.mxu2 }
 0x17e   :  { %v622_v52 = vpop.f32.mrf.mxu1 }
 0x17f   :  { %v533_v53 = vpop.f32.mrf.mxu0 }
 0x180   :  { %v2513_v54 = vadd.f32 %v622_v52, %v533_v53 }
 0x182   :  { %v2082_v55 = vpop.eup %2081  ;;  %v791_v56 = vadd.f32 1e-08, %v2513_v54 }
 0x183   :  { %880 = vperm.xlu2 %2063, %v2082_v55  }
 0x184   :  { %2083 = vrcp.f32 %v791_v56  ;;  %v660_v57 = vpop.f32.mrf.mxu3 }
 0x185   :  { %v571_v62 = vpop.f32.mrf.mxu2 }
 0x186   :  { %v2516_v1 = vadd.f32 %v660_v57, %v571_v62  ;;  %v625_v3 = vpop.f32.mrf.mxu1 }
 0x187   :  { %v536_v7 = vpop.f32.mrf.mxu0 }
 0x188   :  { %v2518_v8 = vadd.f32 %v625_v3, %v536_v7 }
 0x18a   :  { %v2084_v9 = vpop.eup %2083  ;;  %v792_v11 = vadd.f32 1e-08, %v2518_v8 }
 0x18b   :  { %885 = vperm.xlu2 %2063, %v2084_v9  }
 0x18c   :  { %2085 = vrcp.f32 %v792_v11  ;;  %v2521_v12 = vpop.f32.mrf.mxu3 }
 0x18d   :  { %v2523_v13 = vpop.f32.mrf.mxu2 }
 0x18e   :  { %v627_v14 = vpop.f32.mrf.mxu1 }
 0x18f   :  { %v538_v15 = vpop.f32.mrf.mxu0 }
 0x190   :  { %v2525_v16 = vadd.f32 %v627_v14, %v538_v15 }
 0x192   :  { %v2086_v23 = vpop.eup %2085  ;;  %v793_v25 = vadd.f32 1e-08, %v2525_v16 }
 0x193   :  { %890 = vperm.xlu2 %2063, %v2086_v23  }
 0x194   :  { %2087 = vrcp.f32 %v793_v25  ;;  %v665_v29 = vpop.f32.mrf.mxu3 }
 0x195   :  { %v576_v34 = vpop.f32.mrf.mxu2 }
 0x196   :  { %v2528_v37 = vadd.f32 %v665_v29, %v576_v34  ;;  %v630_v38 = vpop.f32.mrf.mxu1 }
 0x197   :  { %v541_v40 = vpop.f32.mrf.mxu0 }
 0x198   :  { %v2530_v42 = vadd.f32 %v630_v38, %v541_v40  ;;  %v2561_v38 = vadd.f32 %v2485_v5, %v2487_v6 }
 0x19a   :  { %v2088_v43 = vpop.eup %2087  ;;  %v794_v44 = vadd.f32 1e-08, %v2530_v42 }
 0x19b   :  { %895 = vperm.xlu2 %2063, %v2088_v43  }
 0x19c   :  { %2089 = vrcp.f32 %v794_v44  ;;  %v2533_v46 = vpop.f32.mrf.mxu3  ;;  %v801_v44 = vadd.f32 1e-08, %v2561_v38 }
 0x19d   :  { %v2535_v48 = vpop.f32.mrf.mxu2 }
 0x19e   :  { %v632_v52 = vpop.f32.mrf.mxu1 }
 0x19f   :  { %v543_v53 = vpop.f32.mrf.mxu0 }
 0x1a0   :  { %v2537_v55 = vadd.f32 %v632_v52, %v543_v53 }
 0x1a2   :  { %v2090_v56 = vpop.eup %2089  ;;  %v795_v57 = vadd.f32 1e-08, %v2537_v55 }
 0x1a3   :  { %900 = vperm.xlu2 %2063, %v2090_v56  }
 0x1a4   :  { %2091 = vrcp.f32 %v795_v57  ;;  %v670_v58 = vpop.f32.mrf.mxu3 }
 0x1a5   :  { %v581_v59 = vpop.f32.mrf.mxu2 }
 0x1a6   :  { %v2540_v60 = vadd.f32 %v670_v58, %v581_v59  ;;  %v635_v62 = vpop.f32.mrf.mxu1 }
 0x1a7   :  { %v546_v63 = vpop.f32.mrf.mxu0 }
 0x1a8   :  { %v2542_v0 = vadd.f32 %v635_v62, %v546_v63 }
 0x1aa   :  { %v2092_v3 = vpop.eup %2091  ;;  %v796_v4 = vadd.f32 1e-08, %v2542_v0 }
 0x1ab   :  { %905 = vperm.xlu2 %2063, %v2092_v3  }
 0x1ac   :  { %2093 = vrcp.f32 %v796_v4  ;;  %v2545_v7 = vpop.f32.mrf.mxu3  ;;  %v2026_v4 = vld [vmem:[#allocation9 + $0x38] sm:$0xff] }
 0x1ad   :  { %v851_v9 = vpop.permute.xlu2 %850  ;;  %v2547_v11 = vpop.f32.mrf.mxu2  ;;  %1564 = vmatpush.bf16.msrb.mxu0 %v2026_v4 }
 0x1ae   :  { %v637_v14 = vpop.f32.mrf.mxu1  ;;  %v1008_v25 = vmul.f32 %v851_v9, %v2473_v47 }
 0x1af   :  { %v548_v15 = vpop.f32.mrf.mxu0 }
 0x1b0   :  { %v2549_v17 = vadd.f32 %v637_v14, %v548_v15  ;;  %v802_v14 = vadd.f32 1e-08, %v2492_v20 }
 0x1b2   :  { %v2094_v18 = vpop.eup %2093  ;;  %v797_v19 = vadd.f32 1e-08, %v2549_v17 }
 0x1b3   :  { %910 = vperm.xlu2 %2063, %v2094_v18  }
 0x1b4   :  { %2095 = vrcp.f32 %v797_v19  ;;  %v675_v21 = vpop.f32.mrf.mxu3 }
 0x1b5   :  { %v856_v22 = vpop.permute.xlu2 %855  ;;  %v586_v23 = vpop.f32.mrf.mxu2 }
 0x1b6   :  { %v1009_v26 = vmul.f32 %v856_v22, %v2476_v51  ;;  %v2554_v29 = vadd.f32 %v675_v21, %v586_v23  ;;  %v640_v30 = vpop.f32.mrf.mxu1  ;;  %v2034_v21 = vld [vmem:[#allocation9 + $0x78] sm:$0xff] }
 0x1b7   :  { %v551_v32 = vpop.f32.mrf.mxu0  ;;  %1653 = vmatpush.bf16.msrb.mxu1 %v2034_v21 }
 0x1b8   :  { %v1040_v33 = vpack.c.bf16 %v1009_v26, %v1008_v25  ;;  %v2556_v34 = vadd.f32 %v640_v30, %v551_v32 }
 0x1ba   :  { %v2096_v35 = vpop.eup %2095  ;;  %v798_v36 = vadd.f32 1e-08, %v2556_v34  ;;  %1166 = vmatmul.bf16.vlgmr.msrb.gmra.mxu2 %v1040_v33  ;;  %1255 = vmatmul.bf16.vlgmr.msrb.gmra.mxu3 %v1040_v33 }
 0x1bb   :  { %915 = vperm.xlu2 %2063, %v2096_v35  }
 0x1bc   :  { %2097 = vrcp.f32 %v798_v36  ;;  %v677_v47 = vpop.f32.mrf.mxu3  ;;  %v804_v36 = vadd.f32 1e-08, %v2504_v41 }
 0x1bd   :  { %v861_v51 = vpop.permute.xlu2 %860  ;;  %v588_v39 = vpop.f32.mrf.mxu2 }
 0x1be   :  { %v2563_v40 = vadd.f32 %v677_v47, %v588_v39  ;;  %v642_v43 = vpop.f32.mrf.mxu1  ;;  %v1010_v62 = vmul.f32 %v861_v51, %v2482_v2  ;;  %v2577_v2 = vadd.f32 %v2497_v27, %v2499_v28  ;;  %v2025_v51 = vld [vmem:[#allocation9 + $0x30] sm:$0xff] }
 0x1bf   :  { %v553_v52 = vpop.f32.mrf.mxu0  ;;  %1565 = vmatpush.bf16.msrb.mxu0 %v2025_v51  ;;  %v812_v51 = vadd.f32 1e-08, %v2554_v29 }
 0x1c0   :  { %v813_v53 = vadd.f32 1e-08, %v2563_v40  ;;  %v2567_v56 = vadd.f32 %v642_v43, %v553_v52  ;;  %v803_v26 = vadd.f32 1e-08, %v2577_v2  ;;  %v2033_v43 = vld [vmem:[#allocation9 + $0x70] sm:$0xff] }
 0x1c1   :  { %1654 = vmatpush.bf16.msrb.mxu1 %v2033_v43  ;;  %v2021_v43 = vld [vmem:[#allocation9 + $0x10] sm:$0xff] }
 0x1c2   :  { %v2098_v57 = vpop.eup %2097  ;;  %2099 = vrcp.f32 %v813_v53  ;;  %v799_v5 = vadd.f32 1e-08, %v2567_v56 }
 0x1c3   :  { %2101 = vrcp.f32 %v801_v44  ;;  %920 = vperm.xlu2 %2063, %v2098_v57   ;;  %v2588_v44 = vadd.f32 %v2509_v49, %v2511_v50  ;;  %v2032_v49 = vld [vmem:[#allocation9 + $0x68] sm:$0xff]  ;;  %v2596_v50 = vadd.f32 %v2521_v12, %v2523_v13  ;;  %v2031_v12 = vld [vmem:[#allocation9 + $0x60] sm:$0xff]  ;;  %v2604_v13 = vadd.f32 %v2533_v46, %v2535_v48 }
 0x1c4   :  { %2103 = vrcp.f32 %v799_v5  ;;  %v680_v6 = vpop.f32.mrf.mxu3  ;;  %v2612_v46 = vadd.f32 %v2545_v7, %v2547_v11 }
 0x1c5   :  { %v866_v58 = vpop.permute.xlu2 %865  ;;  %v591_v59 = vpop.f32.mrf.mxu2  ;;  %2105 = vrcp.f32 %v802_v14  ;;  %1655 = vmatpush.bf16.msrb.mxu1 %v2032_v49 }
 0x1c6   :  { %v1011_v63 = vmul.f32 %v866_v58, %v2489_v10  ;;  %v2572_v3 = vadd.f32 %v680_v6, %v591_v59  ;;  %v806_v6 = vadd.f32 1e-08, %v2516_v1  ;;  %v2024_v59 = vld [vmem:[#allocation9 + $0x28] sm:$0xff] }
 0x1c7   :  { %1566 = vmatpush.bf16.msrb.mxu0 %v2024_v59 }
 0x1c8   :  { %v2100_v9 = vpop.eup %2099  ;;  %v1041_v15 = vpack.c.bf16 %v1011_v63, %v1010_v62  ;;  %v814_v7 = vadd.f32 1e-08, %v2572_v3 }
 0x1c9   :  { %v2102_v18 = vpop.eup %2101  ;;  %995 = vperm.xlu1 %2065, %v2100_v9   ;;  %1656 = vmatpush.bf16.msrb.mxu1 %v2031_v12 }
 0x1ca   :  { %v2104_v19 = vpop.eup %2103  ;;  %1171 = vmatmul.bf16.gmra.mxu2 %v1041_v15  ;;  %1260 = vmatmul.bf16.gmra.mxu3 %v1041_v15  ;;  %v808_v15 = vadd.f32 1e-08, %v2528_v37 }
 0x1cb   :  { %935 = vperm.xlu2 %2063, %v2102_v18   ;;  %925 = vperm.xlu0 %2064, %v2104_v19   ;;  %v2106_v32 = vpop.eup %2105  ;;  %v2023_v19 = vld [vmem:[#allocation9 + $0x20] sm:$0xff] }
 0x1cc   :  { %v682_v10 = vpop.f32.mrf.mxu3  ;;  %1567 = vmatpush.bf16.msrb.mxu0 %v2023_v19 }
 0x1cd   :  { %v871_v22 = vpop.permute.xlu2 %870  ;;  %v593_v23 = vpop.f32.mrf.mxu2 }
 0x1ce   :  { %v2579_v25 = vadd.f32 %v682_v10, %v593_v23  ;;  %v1012_v35 = vmul.f32 %v871_v22, %v2494_v24 }
 0x1d0   :  { %v815_v30 = vadd.f32 1e-08, %v2579_v25 }
 0x1d2   :  { %2107 = vrcp.f32 %v815_v30  ;;  %v810_v30 = vadd.f32 1e-08, %v2540_v60 }
 0x1d3   :  { %940 = vperm.xlu2 %2063, %v2106_v32   ;;  %2109 = vrcp.f32 %v803_v26 }
 0x1d4   :  { %2111 = vrcp.f32 %v804_v36 }
 0x1d5   :  { %v876_v33 = vpop.permute.xlu2 %875 }
 0x1d6   :  { %v1013_v27 = vmul.f32 %v876_v33, %v2501_v31  ;;  %v805_v31 = vadd.f32 1e-08, %v2588_v44  ;;  %v2022_v33 = vld [vmem:[#allocation9 + $0x18] sm:$0xff] }
 0x1d7   :  { %1568 = vmatpush.bf16.msrb.mxu0 %v2022_v33 }
 0x1d8   :  { %v2108_v28 = vpop.eup %2107  ;;  %v1042_v47 = vpack.c.bf16 %v1013_v27, %v1012_v35  ;;  %2113 = vrcp.f32 %v805_v31  ;;  %v2030_v35 = vld [vmem:[#allocation9 + $0x58] sm:$0xff] }
 0x1d9   :  { %1005 = vperm.xlu1 %2065, %v2108_v28   ;;  %v2110_v39 = vpop.eup %2109  ;;  %2115 = vrcp.f32 %v806_v6  ;;  %1657 = vmatpush.bf16.msrb.mxu1 %v2030_v35 }
 0x1da   :  { %1176 = vmatmul.bf16.gmra.mxu2 %v1042_v47  ;;  %1265 = vmatmul.bf16.gmra.mxu3 %v1042_v47  ;;  %v2112_v52 = vpop.eup %2111 }
 0x1db   :  { %945 = vperm.xlu2 %2063, %v2110_v39   ;;  %1569 = vmatpush.bf16.msrb.mxu0 %v2021_v43 }
 0x1dd   :  { %v881_v24 = vpop.permute.xlu2 %880 }
 0x1de   :  { %v1014_v57 = vmul.f32 %v881_v24, %v2506_v45  ;;  %v2114_v62 = vpop.eup %2113  ;;  %v807_v45 = vadd.f32 1e-08, %v2596_v50  ;;  %v2029_v24 = vld [vmem:[#allocation9 + $0x50] sm:$0xff] }
 0x1df   :  { %1658 = vmatpush.bf16.msrb.mxu1 %v2029_v24 }
 0x1e0   :  { %2117 = vrcp.f32 %v807_v45 }
 0x1e1   :  { %2119 = vrcp.f32 %v808_v15 }
 0x1e3   :  { %950 = vperm.xlu2 %2063, %v2112_v52   ;;  %v2020_v52 = vld [vmem:[#allocation9 + $0x8] sm:$0xff] }
 0x1e4   :  { %1570 = vmatpush.bf16.msrb.mxu0 %v2020_v52 }
 0x1e5   :  { %v886_v53 = vpop.permute.xlu2 %885 }
 0x1e6   :  { %v1015_v5 = vmul.f32 %v886_v53, %v2513_v54  ;;  %v2116_v54 = vpop.eup %2115 }
 0x1e7   :  { %v2118_v21 = vpop.eup %2117 }
 0x1e8   :  { %v1043_v58 = vpack.c.bf16 %v1015_v5, %v1014_v57  ;;  %v2019_v57 = vld [vmem:[#allocation9] sm:$0xff] }
 0x1e9   :  { %v2027_v5 = vld [vmem:[#allocation9 + $0x40] sm:$0xff]  ;;  %1571 = vmatpush.bf16.msrb.mxu0 %v2019_v57 }
 0x1ea   :  { %1181 = vmatmul.bf16.gmra.mxu2 %v1043_v58  ;;  %1270 = vmatmul.bf16.gmra.mxu3 %v1043_v58  ;;  %v1072_v58 = vld [vmem:[%s2754_s3] sm:$0x3] }
 0x1eb   :  { %955 = vperm.xlu2 %2063, %v2114_v62   ;;  %v2622_v62 = vperm.slane %v1072_v58, 1 }
 0x1ed   :  { %v891_v63 = vpop.permute.xlu2 %890 }
 0x1ee   :  { %v1016_v9 = vmul.f32 %v891_v63, %v2518_v8  ;;  %v809_v8 = vadd.f32 1e-08, %v2604_v13 }
 0x1f0   :  { %2121 = vrcp.f32 %v809_v8  ;;  %v931_v8 = vpop.permute.xlu1 %930 }
 0x1f1   :  { %2123 = vrcp.f32 %v810_v30  ;;  %v1024_v33 = vmul.f32 %v931_v8, %v2479_v61 }
 0x1f3   :  { %960 = vperm.xlu2 %2063, %v2116_v54   ;;  %v2625_v54 = vperm.slane %v1072_v58, 0 }
 0x1f5   :  { %v896_v4 = vpop.permute.xlu2 %895 }
 0x1f6   :  { %v1017_v14 = vmul.f32 %v896_v4, %v2525_v16  ;;  %v2120_v16 = vpop.eup %2119 }
 0x1f7   :  { %v2122_v27 = vpop.eup %2121 }
 0x1f8   :  { %v1044_v18 = vpack.c.bf16 %v1017_v14, %v1016_v9 }
 0x1fa   :  { %1186 = vmatmul.bf16.gmra.mxu2 %v1044_v18  ;;  %1275 = vmatmul.bf16.gmra.mxu3 %v1044_v18 }
 0x1fb   :  { %965 = vperm.xlu2 %2063, %v2118_v21  }
 0x1fd   :  { %v901_v10 = vpop.permute.xlu2 %900 }
 0x1fe   :  { %v1018_v23 = vmul.f32 %v901_v10, %v2530_v42  ;;  %v811_v42 = vadd.f32 1e-08, %v2612_v46 }
 0x200   :  { %2125 = vrcp.f32 %v811_v42 }
 0x201   :  { %2127 = vrcp.f32 %v812_v51 }
 0x202   :  { %2129 = vrcp.f32 %v814_v7 }
 0x203   :  { %970 = vperm.xlu2 %2063, %v2120_v16  }
 0x205   :  { %v906_v22 = vpop.permute.xlu2 %905 }
 0x206   :  { %v1019_v26 = vmul.f32 %v906_v22, %v2537_v55  ;;  %v2124_v55 = vpop.eup %2123 }
 0x207   :  { %v2126_v31 = vpop.eup %2125 }
 0x208   :  { %v1045_v32 = vpack.c.bf16 %v1019_v26, %v1018_v23  ;;  %v2128_v11 = vpop.eup %2127 }
 0x20a   :  { %1191 = vmatmul.bf16.gmra.mxu2 %v1045_v32  ;;  %1280 = vmatmul.bf16.gmra.mxu3 %v1045_v32 }
 0x20b   :  { %975 = vperm.xlu2 %2063, %v2122_v27  }
 0x20d   :  { %v911_v48 = vpop.permute.xlu2 %910 }
 0x20e   :  { %v1020_v36 = vmul.f32 %v911_v48, %v2542_v0  ;;  %v2130_v0 = vpop.eup %2129 }
 0x213   :  { %980 = vperm.xlu2 %2063, %v2124_v55  }
 0x215   :  { %v916_v28 = vpop.permute.xlu2 %915 }
 0x216   :  { %v1021_v47 = vmul.f32 %v916_v28, %v2549_v17  ;;  %v2028_v17 = vld [vmem:[#allocation9 + $0x48] sm:$0xff] }
 0x217   :  { %1659 = vmatpush.bf16.msrb.mxu1 %v2028_v17 }
 0x218   :  { %v1046_v39 = vpack.c.bf16 %v1021_v47, %v1020_v36 }
 0x21a   :  { %1196 = vmatmul.bf16.gmra.mxu2 %v1046_v39  ;;  %1285 = vmatmul.bf16.gmra.mxu3 %v1046_v39 }
 0x21b   :  { %985 = vperm.xlu2 %2063, %v2126_v31   ;;  %1660 = vmatpush.bf16.msrb.mxu1 %v2027_v5 }
 0x21d   :  { %v921_v53 = vpop.permute.xlu2 %920 }
 0x21e   :  { %v1022_v45 = vmul.f32 %v921_v53, %v2556_v34 }
 0x223   :  { %990 = vperm.xlu2 %2063, %v2128_v11  }
 0x225   :  { %v936_v6 = vpop.permute.xlu2 %935 }
 0x226   :  { %v1025_v22 = vmul.f32 %v936_v6, %v2561_v38 }
 0x228   :  { %v1048_v48 = vpack.c.bf16 %v1025_v22, %v1024_v33 }
 0x22b   :  { %1000 = vperm.xlu2 %2063, %v2130_v0  }
 0x22d   :  { %v941_v9 = vpop.permute.xlu2 %940 }
 0x22e   :  { %v1026_v52 = vmul.f32 %v941_v9, %v2492_v20 }
 0x235   :  { %v946_v10 = vpop.permute.xlu2 %945 }
 0x236   :  { %v1027_v43 = vmul.f32 %v946_v10, %v2577_v2 }
 0x238   :  { %v1049_v57 = vpack.c.bf16 %v1027_v43, %v1026_v52 }
 0x23d   :  { %v1256_v59 = vpop.f32.mrf.mxu3  ;;  %v1167_v49 = vpop.f32.mrf.mxu2 }
 0x23e   :  { %v926_v63 = vpop.permute.xlu0 %925  ;;  %v1257_v15 = vadd.f32 %v1256_v59, %v2622_v62  ;;  %v1168_v18 = vadd.f32 %v1167_v49, %v2625_v54  ;;  %v951_v28 = vpop.permute.xlu2 %950 }
 0x23f   :  { %v1023_v4 = vmul.f32 %v926_v63, %v2567_v56 }
 0x240   :  { %2131 = vtanh.f32 %v1257_v15 }
 0x241   :  { %v1047_v14 = vpack.c.bf16 %v1023_v4, %v1022_v45  ;;  %2133 = vtanh.f32 %v1168_v18 }
 0x243   :  { %1201 = vmatmul.bf16.gmra.mxu2 %v1047_v14  ;;  %1290 = vmatmul.bf16.gmra.mxu3 %v1047_v14 }
 0x245   :  { %v1258_v19 = vpop.f32.mrf.mxu3  ;;  %v1169_v12 = vpop.f32.mrf.mxu2 }
 0x246   :  { %v1259_v21 = vadd.f32 %v1258_v19, %v2622_v62  ;;  %v1170_v34 = vadd.f32 %v1169_v12, %v2625_v54  ;;  %v2132_v56 = vpop.eup %2131  ;;  %v956_v7 = vpop.permute.xlu2 %955  ;;  %v1028_v19 = vmul.f32 %v951_v28, %v2504_v41 }
 0x247   :  { %v2134_v16 = vpop.eup %2133  ;;  %v1029_v4 = vmul.f32 %v956_v7, %v2588_v44 }
 0x248   :  { %2135 = vtanh.f32 %v1259_v21 }
 0x249   :  { %2137 = vtanh.f32 %v1170_v34  ;;  %v1050_v34 = vpack.c.bf16 %v1029_v4, %v1028_v19 }
 0x24d   :  { %v1261_v23 = vpop.f32.mrf.mxu3  ;;  %v1172_v30 = vpop.f32.mrf.mxu2 }
 0x24e   :  { %v2136_v26 = vpop.eup %2135  ;;  %v1262_v42 = vadd.f32 %v1261_v23, %v2622_v62  ;;  %v1173_v55 = vadd.f32 %v1172_v30, %v2625_v54  ;;  %v961_v20 = vpop.permute.xlu2 %960 }
 0x24f   :  { %v2138_v32 = vpop.eup %2137  ;;  %v1401_v35 = vpack.c.bf16 %v2136_v26, %v2132_v56 }
 0x250   :  { %v1400_v27 = vpack.c.bf16 %v2138_v32, %v2134_v16  ;;  %2139 = vtanh.f32 %v1262_v42  ;;  %v1030_v42 = vmul.f32 %v961_v20, %v2516_v1 }
 0x251   :  { %1661 = vmatmul.bf16.vlgmr.msrb.gmra.mxu1 %v1401_v35  ;;  %2141 = vtanh.f32 %v1173_v55 }
 0x252   :  { %1572 = vmatmul.bf16.vlgmr.msrb.gmra.mxu0 %v1400_v27 }
 0x253   :  { %1206 = vmatmul.bf16.gmra.mxu2 %v1048_v48  ;;  %1295 = vmatmul.bf16.gmra.mxu3 %v1048_v48 }
 0x255   :  { %v1263_v36 = vpop.f32.mrf.mxu3  ;;  %v1174_v47 = vpop.f32.mrf.mxu2 }
 0x256   :  { %v1264_v38 = vadd.f32 %v1263_v36, %v2622_v62  ;;  %v1175_v61 = vadd.f32 %v1174_v47, %v2625_v54  ;;  %v2140_v51 = vpop.eup %2139  ;;  %v966_v10 = vpop.permute.xlu2 %965 }
 0x257   :  { %v2142_v39 = vpop.eup %2141  ;;  %v1031_v32 = vmul.f32 %v966_v10, %v2596_v50 }
 0x258   :  { %2143 = vtanh.f32 %v1264_v38 }
 0x259   :  { %2145 = vtanh.f32 %v1175_v61  ;;  %v1051_v36 = vpack.c.bf16 %v1031_v32, %v1030_v42 }
 0x25d   :  { %v1266_v24 = vpop.f32.mrf.mxu3  ;;  %v1177_v11 = vpop.f32.mrf.mxu2 }
 0x25e   :  { %v2144_v31 = vpop.eup %2143  ;;  %v1267_v5 = vadd.f32 %v1266_v24, %v2622_v62  ;;  %v1178_v6 = vadd.f32 %v1177_v11, %v2625_v54  ;;  %v971_v26 = vpop.permute.xlu2 %970 }
 0x25f   :  { %v2146_v0 = vpop.eup %2145  ;;  %v1403_v17 = vpack.c.bf16 %v2144_v31, %v2140_v51 }
 0x260   :  { %v1402_v53 = vpack.c.bf16 %v2146_v0, %v2142_v39  ;;  %2147 = vtanh.f32 %v1267_v5 }
 0x261   :  { %1666 = vmatmul.bf16.gmra.mxu1 %v1403_v17  ;;  %2149 = vtanh.f32 %v1178_v6  ;;  %v1032_v17 = vmul.f32 %v971_v26, %v2528_v37 }
 0x262   :  { %1577 = vmatmul.bf16.gmra.mxu0 %v1402_v53 }
 0x263   :  { %1211 = vmatmul.bf16.gmra.mxu2 %v1049_v57  ;;  %1300 = vmatmul.bf16.gmra.mxu3 %v1049_v57 }
 0x265   :  { %v1268_v58 = vpop.f32.mrf.mxu3  ;;  %v1179_v59 = vpop.f32.mrf.mxu2 }
 0x266   :  { %v1269_v2 = vadd.f32 %v1268_v58, %v2622_v62  ;;  %v1180_v49 = vadd.f32 %v1179_v59, %v2625_v54  ;;  %v2148_v63 = vpop.eup %2147  ;;  %v976_v51 = vpop.permute.xlu2 %975 }
 0x267   :  { %v2150_v45 = vpop.eup %2149  ;;  %v1033_v31 = vmul.f32 %v976_v51, %v2604_v13  ;;  %v2677_v51 = vld [vmem:[%s2756_s5] ss:$0 sm:$0xff]  ;;  %s2398_s5 = smov [#allocation11]  }
 0x268   :  { %2151 = vtanh.f32 %v1269_v2  ;;  %s1778_s22 = sshll.u32 %s2398_s5, 4  ;;  %s1779_s22 = int_to_ptr.vmem [resolvable:$true] %s1778_s22 }
 0x269   :  { %2153 = vtanh.f32 %v1180_v49  ;;  %v1052_v6 = vpack.c.bf16 %v1033_v31, %v1032_v17 }
 0x26d   :  { %v1271_v9 = vpop.f32.mrf.mxu3  ;;  %v1182_v15 = vpop.f32.mrf.mxu2 }
 0x26e   :  { %v2152_v14 = vpop.eup %2151  ;;  %v1272_v56 = vadd.f32 %v1271_v9, %v2622_v62  ;;  %v1183_v8 = vadd.f32 %v1182_v15, %v2625_v54  ;;  %v981_v57 = vpop.permute.xlu2 %980 }
 0x26f   :  { %v2154_v18 = vpop.eup %2153  ;;  %v1405_v21 = vpack.c.bf16 %v2152_v14, %v2148_v63  ;;  %v1034_v19 = vmul.f32 %v981_v57, %v2540_v60 }
 0x270   :  { %v1404_v12 = vpack.c.bf16 %v2154_v18, %v2150_v45  ;;  %2155 = vtanh.f32 %v1272_v56 }
 0x271   :  { %1671 = vmatmul.bf16.gmra.mxu1 %v1405_v21  ;;  %2157 = vtanh.f32 %v1183_v8 }
 0x272   :  { %1582 = vmatmul.bf16.gmra.mxu0 %v1404_v12 }
 0x273   :  { %1216 = vmatmul.bf16.gmra.mxu2 %v1050_v34  ;;  %1305 = vmatmul.bf16.gmra.mxu3 %v1050_v34 }
 0x275   :  { %v1273_v16 = vpop.f32.mrf.mxu3  ;;  %v1184_v22 = vpop.f32.mrf.mxu2 }
 0x276   :  { %v1274_v44 = vadd.f32 %v1273_v16, %v2622_v62  ;;  %v1185_v41 = vadd.f32 %v1184_v22, %v2625_v54  ;;  %v2156_v23 = vpop.eup %2155  ;;  %v986_v20 = vpop.permute.xlu2 %985 }
 0x277   :  { %v2158_v30 = vpop.eup %2157  ;;  %v1035_v4 = vmul.f32 %v986_v20, %v2612_v46 }
 0x278   :  { %2159 = vtanh.f32 %v1274_v44 }
 0x279   :  { %2161 = vtanh.f32 %v1185_v41  ;;  %v1053_v34 = vpack.c.bf16 %v1035_v4, %v1034_v19  ;;  %v996_v41 = vpop.permute.xlu1 %995 }
 0x27d   :  { %v1276_v33 = vpop.f32.mrf.mxu3  ;;  %v1187_v27 = vpop.f32.mrf.mxu2 }
 0x27e   :  { %v2160_v35 = vpop.eup %2159  ;;  %v1277_v38 = vadd.f32 %v1276_v33, %v2622_v62  ;;  %v1188_v47 = vadd.f32 %v1187_v27, %v2625_v54  ;;  %v991_v60 = vpop.permute.xlu2 %990  ;;  %v1037_v33 = vmul.f32 %v996_v41, %v2563_v40 }
 0x27f   :  { %v2162_v48 = vpop.eup %2161  ;;  %v1407_v55 = vpack.c.bf16 %v2160_v35, %v2156_v23  ;;  %v1036_v26 = vmul.f32 %v991_v60, %v2554_v29 }
 0x280   :  { %v1406_v28 = vpack.c.bf16 %v2162_v48, %v2158_v30  ;;  %2163 = vtanh.f32 %v1277_v38 }
 0x281   :  { %1676 = vmatmul.bf16.gmra.mxu1 %v1407_v55  ;;  %2165 = vtanh.f32 %v1188_v47  ;;  %v1054_v48 = vpack.c.bf16 %v1037_v33, %v1036_v26  ;;  %v1006_v55 = vpop.permute.xlu1 %1005 }
 0x282   :  { %1587 = vmatmul.bf16.gmra.mxu0 %v1406_v28 }
 0x283   :  { %1221 = vmatmul.bf16.gmra.mxu2 %v1051_v36  ;;  %1310 = vmatmul.bf16.gmra.mxu3 %v1051_v36  ;;  %v1039_v36 = vmul.f32 %v1006_v55, %v2579_v25 }
 0x285   :  { %v1278_v61 = vpop.f32.mrf.mxu3  ;;  %v1189_v39 = vpop.f32.mrf.mxu2 }
 0x286   :  { %v1279_v50 = vadd.f32 %v1278_v61, %v2622_v62  ;;  %v1190_v1 = vadd.f32 %v1189_v39, %v2625_v54  ;;  %v2164_v43 = vpop.eup %2163  ;;  %v1001_v42 = vpop.permute.xlu2 %1000 }
 0x287   :  { %v2166_v24 = vpop.eup %2165  ;;  %v1038_v28 = vmul.f32 %v1001_v42, %v2572_v3 }
 0x288   :  { %2167 = vtanh.f32 %v1279_v50 }
 0x289   :  { %2169 = vtanh.f32 %v1190_v1  ;;  %v1055_v38 = vpack.c.bf16 %v1039_v36, %v1038_v28 }
 0x28d   :  { %v1281_v7 = vpop.f32.mrf.mxu3  ;;  %v1192_v0 = vpop.f32.mrf.mxu2 }
 0x28e   :  { %v2168_v11 = vpop.eup %2167  ;;  %v1282_v58 = vadd.f32 %v1281_v7, %v2622_v62  ;;  %v1193_v2 = vadd.f32 %v1192_v0, %v2625_v54 }
 0x28f   :  { %v2170_v52 = vpop.eup %2169  ;;  %v1409_v53 = vpack.c.bf16 %v2168_v11, %v2164_v43 }
 0x290   :  { %v1408_v5 = vpack.c.bf16 %v2170_v52, %v2166_v24  ;;  %2171 = vtanh.f32 %v1282_v58 }
 0x291   :  { %1681 = vmatmul.bf16.gmra.mxu1 %v1409_v53  ;;  %2173 = vtanh.f32 %v1193_v2 }
 0x292   :  { %1592 = vmatmul.bf16.gmra.mxu0 %v1408_v5 }
 0x293   :  { %1226 = vmatmul.bf16.gmra.mxu2 %v1052_v6  ;;  %1315 = vmatmul.bf16.gmra.mxu3 %v1052_v6 }
 0x295   :  { %v1283_v59 = vpop.f32.mrf.mxu3  ;;  %v1194_v13 = vpop.f32.mrf.mxu2 }
 0x296   :  { %v1284_v49 = vadd.f32 %v1283_v59, %v2622_v62  ;;  %v1195_v37 = vadd.f32 %v1194_v13, %v2625_v54  ;;  %v2172_v63 = vpop.eup %2171 }
 0x297   :  { %v2174_v45 = vpop.eup %2173 }
 0x298   :  { %2175 = vtanh.f32 %v1284_v49 }
 0x299   :  { %2177 = vtanh.f32 %v1195_v37 }
 0x29d   :  { %v1286_v9 = vpop.f32.mrf.mxu3  ;;  %v1197_v15 = vpop.f32.mrf.mxu2 }
 0x29e   :  { %v2176_v14 = vpop.eup %2175  ;;  %v1287_v10 = vadd.f32 %v1286_v9, %v2622_v62  ;;  %v1198_v56 = vadd.f32 %v1197_v15, %v2625_v54 }
 0x29f   :  { %v2178_v18 = vpop.eup %2177  ;;  %v1411_v21 = vpack.c.bf16 %v2176_v14, %v2172_v63 }
 0x2a0   :  { %v1410_v12 = vpack.c.bf16 %v2178_v18, %v2174_v45  ;;  %2179 = vtanh.f32 %v1287_v10 }
 0x2a1   :  { %1686 = vmatmul.bf16.gmra.mxu1 %v1411_v21  ;;  %2181 = vtanh.f32 %v1198_v56 }
 0x2a2   :  { %1597 = vmatmul.bf16.gmra.mxu0 %v1410_v12 }
 0x2a3   :  { %1231 = vmatmul.bf16.gmra.mxu2 %v1053_v34  ;;  %1320 = vmatmul.bf16.gmra.mxu3 %v1053_v34 }
 0x2a5   :  { %v1288_v8 = vpop.f32.mrf.mxu3  ;;  %v1199_v46 = vpop.f32.mrf.mxu2 }
 0x2a6   :  { %v1289_v16 = vadd.f32 %v1288_v8, %v2622_v62  ;;  %v1200_v44 = vadd.f32 %v1199_v46, %v2625_v54  ;;  %v2180_v22 = vpop.eup %2179 }
 0x2a7   :  { %v2182_v23 = vpop.eup %2181 }
 0x2a8   :  { %2183 = vtanh.f32 %v1289_v16 }
 0x2a9   :  { %2185 = vtanh.f32 %v1200_v44 }
 0x2ae   :  { %v2184_v30 = vpop.eup %2183 }
 0x2af   :  { %v2186_v32 = vpop.eup %2185  ;;  %v1413_v35 = vpack.c.bf16 %v2184_v30, %v2180_v22 }
 0x2b0   :  { %v1412_v27 = vpack.c.bf16 %v2186_v32, %v2182_v23 }
 0x2b1   :  { %1691 = vmatmul.bf16.gmra.mxu1 %v1413_v35 }
 0x2b2   :  { %1602 = vmatmul.bf16.gmra.mxu0 %v1412_v27 }
 0x2b3   :  { %1236 = vmatmul.bf16.gmra.mxu2 %v1054_v48  ;;  %1325 = vmatmul.bf16.gmra.mxu3 %v1054_v48 }
 0x2c3   :  { %1241 = vmatmul.bf16.gmra.mxu2 %v1055_v38  ;;  %1330 = vmatmul.bf16.gmra.mxu3 %v1055_v38 }
 0x2c6   :  { %v1202_v29 = vpop.f32.mrf.mxu2  ;;  %v1291_v47 = vpop.f32.mrf.mxu3 }
 0x2c7   :  { %v1203_v40 = vadd.f32 %v1202_v29, %v2625_v54  ;;  %v1292_v61 = vadd.f32 %v1291_v47, %v2622_v62 }
 0x2c9   :  { %2187 = vtanh.f32 %v1203_v40 }
 0x2ca   :  { %2189 = vtanh.f32 %v1292_v61 }
 0x2ce   :  { %v1204_v50 = vpop.f32.mrf.mxu2  ;;  %v1293_v39 = vpop.f32.mrf.mxu3 }
 0x2cf   :  { %v1205_v3 = vadd.f32 %v1204_v50, %v2625_v54  ;;  %v1294_v25 = vadd.f32 %v1293_v39, %v2622_v62  ;;  %v1573_v1 = vpop.f32.mrf.mxu0  ;;  %v1662_v43 = vpop.f32.mrf.mxu1 }
 0x2d0   :  { %v1574_v24 = vadd.f32 %v2677_v51, %v1573_v1  ;;  %v2188_v7 = vpop.eup %2187 }
 0x2d1   :  { %2191 = vtanh.f32 %v1205_v3  ;;  %v2190_v11 = vpop.eup %2189 }
 0x2d2   :  { %2193 = vtanh.f32 %v1294_v25  ;;  %v1663_v31 = vadd.f32 %v1662_v43, %v1574_v24 }
 0x2d4   :  { %1742 = vst [vmem:[#allocation11] sm:$0xff] %v1663_v31 }
 0x2d6   :  { %v1207_v0 = vpop.f32.mrf.mxu2  ;;  %v1296_v52 = vpop.f32.mrf.mxu3 }
 0x2d7   :  { %v2192_v17 = vpop.eup %2191  ;;  %v1575_v53 = vpop.f32.mrf.mxu0  ;;  %v1208_v13 = vadd.f32 %v1207_v0, %v2625_v54  ;;  %v1297_v49 = vadd.f32 %v1296_v52, %v2622_v62 }
 0x2d8   :  { %v1664_v57 = vpop.f32.mrf.mxu1  ;;  %v2194_v5 = vpop.eup %2193  ;;  %v1576_v6 = vadd.f32 %v2677_v51, %v1575_v53  ;;  %v1414_v58 = vpack.c.bf16 %v2192_v17, %v2188_v7 }
 0x2d9   :  { %v1415_v2 = vpack.c.bf16 %v2194_v5, %v2190_v11  ;;  %2195 = vtanh.f32 %v1208_v13 }
 0x2da   :  { %v1665_v59 = vadd.f32 %v1664_v57, %v1576_v6  ;;  %1607 = vmatmul.bf16.gmra.mxu0 %v1414_v58  ;;  %2197 = vtanh.f32 %v1297_v49 }
 0x2db   :  { %1696 = vmatmul.bf16.gmra.mxu1 %v1415_v2 }
 0x2dc   :  { %1743 = vst [vmem:[#allocation11 + $0x8] sm:$0xff] %v1665_v59 }
 0x2de   :  { %v1209_v37 = vpop.f32.mrf.mxu2  ;;  %v1298_v20 = vpop.f32.mrf.mxu3 }
 0x2df   :  { %v1210_v63 = vadd.f32 %v1209_v37, %v2625_v54  ;;  %v1299_v45 = vadd.f32 %v1298_v20, %v2622_v62  ;;  %v1578_v4 = vpop.f32.mrf.mxu0  ;;  %v2196_v18 = vpop.eup %2195 }
 0x2e0   :  { %v1667_v9 = vpop.f32.mrf.mxu1  ;;  %v1579_v14 = vadd.f32 %v2677_v51, %v1578_v4  ;;  %v2198_v19 = vpop.eup %2197 }
 0x2e1   :  { %2199 = vtanh.f32 %v1210_v63 }
 0x2e2   :  { %2201 = vtanh.f32 %v1299_v45  ;;  %v1668_v15 = vadd.f32 %v1667_v9, %v1579_v14 }
 0x2e4   :  { %1744 = vst [vmem:[#allocation11 + $0x10] sm:$0xff] %v1668_v15 }
 0x2e6   :  { %v1212_v21 = vpop.f32.mrf.mxu2  ;;  %v1301_v12 = vpop.f32.mrf.mxu3 }
 0x2e7   :  { %v2200_v34 = vpop.eup %2199  ;;  %v1580_v10 = vpop.f32.mrf.mxu0  ;;  %v1213_v22 = vadd.f32 %v1212_v21, %v2625_v54  ;;  %v1302_v41 = vadd.f32 %v1301_v12, %v2622_v62 }
 0x2e8   :  { %v1669_v56 = vpop.f32.mrf.mxu1  ;;  %v2202_v8 = vpop.eup %2201  ;;  %v1581_v46 = vadd.f32 %v2677_v51, %v1580_v10  ;;  %v1416_v16 = vpack.c.bf16 %v2200_v34, %v2196_v18 }
 0x2e9   :  { %v1417_v44 = vpack.c.bf16 %v2202_v8, %v2198_v19  ;;  %2203 = vtanh.f32 %v1213_v22 }
 0x2ea   :  { %v1670_v60 = vadd.f32 %v1669_v56, %v1581_v46  ;;  %1612 = vmatmul.bf16.gmra.mxu0 %v1416_v16  ;;  %2205 = vtanh.f32 %v1302_v41 }
 0x2eb   :  { %1701 = vmatmul.bf16.gmra.mxu1 %v1417_v44 }
 0x2ec   :  { %1745 = vst [vmem:[#allocation11 + $0x18] sm:$0xff] %v1670_v60 }
 0x2ee   :  { %v1214_v23 = vpop.f32.mrf.mxu2  ;;  %v1303_v26 = vpop.f32.mrf.mxu3 }
 0x2ef   :  { %v1215_v30 = vadd.f32 %v1214_v23, %v2625_v54  ;;  %v1304_v32 = vadd.f32 %v1303_v26, %v2622_v62  ;;  %v1583_v33 = vpop.f32.mrf.mxu0  ;;  %v2204_v42 = vpop.eup %2203 }
 0x2f0   :  { %v1672_v35 = vpop.f32.mrf.mxu1  ;;  %v1584_v27 = vadd.f32 %v2677_v51, %v1583_v33  ;;  %v2206_v55 = vpop.eup %2205 }
 0x2f1   :  { %2207 = vtanh.f32 %v1215_v30 }
 0x2f2   :  { %2209 = vtanh.f32 %v1304_v32  ;;  %v1673_v48 = vadd.f32 %v1672_v35, %v1584_v27 }
 0x2f4   :  { %1746 = vst [vmem:[#allocation11 + $0x20] sm:$0xff] %v1673_v48 }
 0x2f6   :  { %v1217_v28 = vpop.f32.mrf.mxu2  ;;  %v1306_v36 = vpop.f32.mrf.mxu3 }
 0x2f7   :  { %v2208_v38 = vpop.eup %2207  ;;  %v1585_v29 = vpop.f32.mrf.mxu0  ;;  %v1218_v25 = vadd.f32 %v1217_v28, %v2625_v54  ;;  %v1307_v1 = vadd.f32 %v1306_v36, %v2622_v62 }
 0x2f8   :  { %v1674_v47 = vpop.f32.mrf.mxu1  ;;  %v2210_v40 = vpop.eup %2209  ;;  %v1586_v61 = vadd.f32 %v2677_v51, %v1585_v29  ;;  %v1418_v50 = vpack.c.bf16 %v2208_v38, %v2204_v42 }
 0x2f9   :  { %v1419_v39 = vpack.c.bf16 %v2210_v40, %v2206_v55  ;;  %2211 = vtanh.f32 %v1218_v25 }
 0x2fa   :  { %v1675_v3 = vadd.f32 %v1674_v47, %v1586_v61  ;;  %1617 = vmatmul.bf16.gmra.mxu0 %v1418_v50  ;;  %2213 = vtanh.f32 %v1307_v1 }
 0x2fb   :  { %1706 = vmatmul.bf16.gmra.mxu1 %v1419_v39 }
 0x2fc   :  { %1747 = vst [vmem:[#allocation11 + $0x28] sm:$0xff] %v1675_v3 }
 0x2fe   :  { %v1219_v43 = vpop.f32.mrf.mxu2  ;;  %v1308_v24 = vpop.f32.mrf.mxu3 }
 0x2ff   :  { %v1220_v31 = vadd.f32 %v1219_v43, %v2625_v54  ;;  %v1309_v7 = vadd.f32 %v1308_v24, %v2622_v62  ;;  %v1588_v11 = vpop.f32.mrf.mxu0  ;;  %v2212_v53 = vpop.eup %2211 }
 0x300   :  { %v1677_v0 = vpop.f32.mrf.mxu1  ;;  %v1589_v52 = vadd.f32 %v2677_v51, %v1588_v11  ;;  %v2214_v57 = vpop.eup %2213 }
 0x301   :  { %2215 = vtanh.f32 %v1220_v31 }
 0x302   :  { %2217 = vtanh.f32 %v1309_v7  ;;  %v1678_v17 = vadd.f32 %v1677_v0, %v1589_v52 }
 0x304   :  { %1748 = vst [vmem:[#allocation11 + $0x30] sm:$0xff] %v1678_v17 }
 0x306   :  { %v1222_v5 = vpop.f32.mrf.mxu2  ;;  %v1311_v6 = vpop.f32.mrf.mxu3 }
 0x307   :  { %v2216_v58 = vpop.eup %2215  ;;  %v1590_v2 = vpop.f32.mrf.mxu0  ;;  %v1223_v45 = vadd.f32 %v1222_v5, %v2625_v54  ;;  %v1312_v4 = vadd.f32 %v1311_v6, %v2622_v62 }
 0x308   :  { %v1679_v59 = vpop.f32.mrf.mxu1  ;;  %v2218_v13 = vpop.eup %2217  ;;  %v1591_v49 = vadd.f32 %v2677_v51, %v1590_v2  ;;  %v1420_v37 = vpack.c.bf16 %v2216_v58, %v2212_v53 }
 0x309   :  { %v1421_v20 = vpack.c.bf16 %v2218_v13, %v2214_v57  ;;  %2219 = vtanh.f32 %v1223_v45 }
 0x30a   :  { %v1680_v63 = vadd.f32 %v1679_v59, %v1591_v49  ;;  %1622 = vmatmul.bf16.gmra.mxu0 %v1420_v37  ;;  %2221 = vtanh.f32 %v1312_v4 }
 0x30b   :  { %1711 = vmatmul.bf16.gmra.mxu1 %v1421_v20 }
 0x30c   :  { %1749 = vst [vmem:[#allocation11 + $0x38] sm:$0xff] %v1680_v63 }
 0x30e   :  { %v1224_v9 = vpop.f32.mrf.mxu2  ;;  %v1313_v14 = vpop.f32.mrf.mxu3 }
 0x30f   :  { %v1225_v15 = vadd.f32 %v1224_v9, %v2625_v54  ;;  %v1314_v18 = vadd.f32 %v1313_v14, %v2622_v62  ;;  %v1593_v19 = vpop.f32.mrf.mxu0  ;;  %v2220_v10 = vpop.eup %2219 }
 0x310   :  { %v1682_v21 = vpop.f32.mrf.mxu1  ;;  %v1594_v12 = vadd.f32 %v2677_v51, %v1593_v19  ;;  %v2222_v56 = vpop.eup %2221 }
 0x311   :  { %2223 = vtanh.f32 %v1225_v15 }
 0x312   :  { %2225 = vtanh.f32 %v1314_v18  ;;  %v1683_v34 = vadd.f32 %v1682_v21, %v1594_v12 }
 0x314   :  { %1750 = vst [vmem:[#allocation11 + $0x40] sm:$0xff] %v1683_v34 }
 0x316   :  { %v1227_v8 = vpop.f32.mrf.mxu2  ;;  %v1316_v46 = vpop.f32.mrf.mxu3 }
 0x317   :  { %v2224_v16 = vpop.eup %2223  ;;  %v1595_v44 = vpop.f32.mrf.mxu0  ;;  %v1228_v32 = vadd.f32 %v1227_v8, %v2625_v54  ;;  %v1317_v33 = vadd.f32 %v1316_v46, %v2622_v62 }
 0x318   :  { %v1684_v60 = vpop.f32.mrf.mxu1  ;;  %v2226_v22 = vpop.eup %2225  ;;  %v1596_v41 = vadd.f32 %v2677_v51, %v1595_v44  ;;  %v1422_v23 = vpack.c.bf16 %v2224_v16, %v2220_v10 }
 0x319   :  { %v1423_v26 = vpack.c.bf16 %v2226_v22, %v2222_v56  ;;  %2227 = vtanh.f32 %v1228_v32 }
 0x31a   :  { %v1685_v30 = vadd.f32 %v1684_v60, %v1596_v41  ;;  %1627 = vmatmul.bf16.gmra.mxu0 %v1422_v23  ;;  %2229 = vtanh.f32 %v1317_v33 }
 0x31b   :  { %1716 = vmatmul.bf16.gmra.mxu1 %v1423_v26 }
 0x31c   :  { %1751 = vst [vmem:[#allocation11 + $0x48] sm:$0xff] %v1685_v30 }
 0x31e   :  { %v1229_v35 = vpop.f32.mrf.mxu2  ;;  %v1318_v27 = vpop.f32.mrf.mxu3 }
 0x31f   :  { %v1230_v48 = vadd.f32 %v1229_v35, %v2625_v54  ;;  %v1319_v42 = vadd.f32 %v1318_v27, %v2622_v62  ;;  %v1598_v55 = vpop.f32.mrf.mxu0  ;;  %v2228_v29 = vpop.eup %2227 }
 0x320   :  { %v1687_v28 = vpop.f32.mrf.mxu1  ;;  %v1599_v36 = vadd.f32 %v2677_v51, %v1598_v55  ;;  %v2230_v47 = vpop.eup %2229 }
 0x321   :  { %2231 = vtanh.f32 %v1230_v48 }
 0x322   :  { %2233 = vtanh.f32 %v1319_v42  ;;  %v1688_v38 = vadd.f32 %v1687_v28, %v1599_v36 }
 0x324   :  { %1752 = vst [vmem:[#allocation11 + $0x50] sm:$0xff] %v1688_v38 }
 0x326   :  { %v1232_v40 = vpop.f32.mrf.mxu2  ;;  %v1321_v61 = vpop.f32.mrf.mxu3 }
 0x327   :  { %v2232_v50 = vpop.eup %2231  ;;  %v1600_v39 = vpop.f32.mrf.mxu0  ;;  %v1233_v7 = vadd.f32 %v1232_v40, %v2625_v54  ;;  %v1322_v11 = vadd.f32 %v1321_v61, %v2622_v62 }
 0x328   :  { %v1689_v3 = vpop.f32.mrf.mxu1  ;;  %v2234_v25 = vpop.eup %2233  ;;  %v1601_v1 = vadd.f32 %v2677_v51, %v1600_v39  ;;  %v1424_v43 = vpack.c.bf16 %v2232_v50, %v2228_v29 }
 0x329   :  { %v1425_v24 = vpack.c.bf16 %v2234_v25, %v2230_v47  ;;  %2235 = vtanh.f32 %v1233_v7 }
 0x32a   :  { %v1690_v31 = vadd.f32 %v1689_v3, %v1601_v1  ;;  %1632 = vmatmul.bf16.gmra.mxu0 %v1424_v43  ;;  %2237 = vtanh.f32 %v1322_v11 }
 0x32b   :  { %1721 = vmatmul.bf16.gmra.mxu1 %v1425_v24 }
 0x32c   :  { %1753 = vst [vmem:[#allocation11 + $0x58] sm:$0xff] %v1690_v31 }
 0x32e   :  { %v1234_v0 = vpop.f32.mrf.mxu2  ;;  %v1323_v52 = vpop.f32.mrf.mxu3 }
 0x32f   :  { %v1235_v17 = vadd.f32 %v1234_v0, %v2625_v54  ;;  %v1324_v53 = vadd.f32 %v1323_v52, %v2622_v62  ;;  %v1603_v57 = vpop.f32.mrf.mxu0  ;;  %v2236_v2 = vpop.eup %2235 }
 0x330   :  { %v1692_v5 = vpop.f32.mrf.mxu1  ;;  %v1604_v6 = vadd.f32 %v2677_v51, %v1603_v57  ;;  %v2238_v59 = vpop.eup %2237 }
 0x331   :  { %2239 = vtanh.f32 %v1235_v17 }
 0x332   :  { %2241 = vtanh.f32 %v1324_v53  ;;  %v1693_v58 = vadd.f32 %v1692_v5, %v1604_v6 }
 0x334   :  { %1754 = vst [vmem:[#allocation11 + $0x60] sm:$0xff] %v1693_v58 }
 0x336   :  { %v1237_v13 = vpop.f32.mrf.mxu2  ;;  %v1326_v49 = vpop.f32.mrf.mxu3 }
 0x337   :  { %v2240_v37 = vpop.eup %2239  ;;  %v1605_v20 = vpop.f32.mrf.mxu0  ;;  %v1238_v18 = vadd.f32 %v1237_v13, %v2625_v54  ;;  %v1327_v19 = vadd.f32 %v1326_v49, %v2622_v62 }
 0x338   :  { %v2242_v63 = vpop.eup %2241  ;;  %v1606_v45 = vadd.f32 %v2677_v51, %v1605_v20  ;;  %v1426_v4 = vpack.c.bf16 %v2240_v37, %v2236_v2  ;;  %v1694_v9 = vpop.f32.mrf.mxu1 }
 0x339   :  { %v1427_v14 = vpack.c.bf16 %v2242_v63, %v2238_v59  ;;  %2243 = vtanh.f32 %v1238_v18 }
 0x33a   :  { %v1695_v15 = vadd.f32 %v1694_v9, %v1606_v45  ;;  %1637 = vmatmul.bf16.gmra.mxu0 %v1426_v4  ;;  %2245 = vtanh.f32 %v1327_v19 }
 0x33b   :  { %1726 = vmatmul.bf16.gmra.mxu1 %v1427_v14 }
 0x33c   :  { %1755 = vst [vmem:[#allocation11 + $0x68] sm:$0xff] %v1695_v15 }
 0x33e   :  { %v1239_v21 = vpop.f32.mrf.mxu2  ;;  %v1328_v12 = vpop.f32.mrf.mxu3 }
 0x33f   :  { %v1240_v34 = vadd.f32 %v1239_v21, %v2625_v54  ;;  %v1329_v10 = vadd.f32 %v1328_v12, %v2622_v62  ;;  %v2244_v56 = vpop.eup %2243 }
 0x340   :  { %v2246_v8 = vpop.eup %2245 }
 0x341   :  { %2247 = vtanh.f32 %v1240_v34 }
 0x342   :  { %2249 = vtanh.f32 %v1329_v10 }
 0x346   :  { %v1242_v46 = vpop.f32.mrf.mxu2  ;;  %v1331_v16 = vpop.f32.mrf.mxu3 }
 0x347   :  { %v2248_v44 = vpop.eup %2247  ;;  %v1243_v23 = vadd.f32 %v1242_v46, %v2625_v54  ;;  %v1332_v26 = vadd.f32 %v1331_v16, %v2622_v62 }
 0x348   :  { %v2250_v60 = vpop.eup %2249  ;;  %v1428_v22 = vpack.c.bf16 %v2248_v44, %v2244_v56 }
 0x349   :  { %v1429_v41 = vpack.c.bf16 %v2250_v60, %v2246_v8  ;;  %2251 = vtanh.f32 %v1243_v23 }
 0x34a   :  { %1642 = vmatmul.bf16.gmra.mxu0 %v1428_v22  ;;  %2253 = vtanh.f32 %v1332_v26 }
 0x34b   :  { %1731 = vmatmul.bf16.gmra.mxu1 %v1429_v41 }
 0x34e   :  { %v1244_v30 = vpop.f32.mrf.mxu2  ;;  %v1333_v32 = vpop.f32.mrf.mxu3 }
 0x34f   :  { %v1245_v33 = vadd.f32 %v1244_v30, %v2625_v54  ;;  %v1334_v35 = vadd.f32 %v1333_v32, %v2622_v62  ;;  %v2252_v27 = vpop.eup %2251 }
 0x350   :  { %v2254_v48 = vpop.eup %2253 }
 0x351   :  { %2255 = vtanh.f32 %v1245_v33 }
 0x352   :  { %2257 = vtanh.f32 %v1334_v35 }
 0x357   :  { %v2256_v42 = vpop.eup %2255  ;;  %v1608_v55 = vpop.f32.mrf.mxu0 }
 0x358   :  { %v2258_v28 = vpop.eup %2257  ;;  %v1609_v36 = vadd.f32 %v2677_v51, %v1608_v55  ;;  %v1697_v38 = vpop.f32.mrf.mxu1  ;;  %v1430_v29 = vpack.c.bf16 %v2256_v42, %v2252_v27 }
 0x359   :  { %v1431_v47 = vpack.c.bf16 %v2258_v28, %v2254_v48 }
 0x35a   :  { %v1698_v40 = vadd.f32 %v1697_v38, %v1609_v36  ;;  %1647 = vmatmul.bf16.gmra.mxu0 %v1430_v29 }
 0x35b   :  { %1736 = vmatmul.bf16.gmra.mxu1 %v1431_v47 }
 0x35c   :  { %1756 = vst [vmem:[#allocation11 + $0x70] sm:$0xff] %v1698_v40 }
 0x35f   :  { %v1610_v54 = vpop.f32.mrf.mxu0 }
 0x360   :  { %v1611_v62 = vadd.f32 %v2677_v51, %v1610_v54  ;;  %v1699_v61 = vpop.f32.mrf.mxu1 }
 0x362   :  { %v1700_v50 = vadd.f32 %v1699_v61, %v1611_v62 }
 0x364   :  { %1757 = vst [vmem:[#allocation11 + $0x78] sm:$0xff] %v1700_v50 }
 0x367   :  { %v1613_v39 = vpop.f32.mrf.mxu0 }
 0x368   :  { %v1614_v3 = vadd.f32 %v2677_v51, %v1613_v39  ;;  %v1702_v25 = vpop.f32.mrf.mxu1 }
 0x36a   :  { %v1703_v1 = vadd.f32 %v1702_v25, %v1614_v3 }
 0x36c   :  { %1758 = vst [vmem:[#allocation11 + $0x80] sm:$0xff] %v1703_v1 }
 0x36f   :  { %v1615_v43 = vpop.f32.mrf.mxu0 }
 0x370   :  { %v1616_v24 = vadd.f32 %v2677_v51, %v1615_v43  ;;  %v1704_v31 = vpop.f32.mrf.mxu1 }
 0x372   :  { %v1705_v7 = vadd.f32 %v1704_v31, %v1616_v24 }
 0x374   :  { %1759 = vst [vmem:[#allocation11 + $0x88] sm:$0xff] %v1705_v7 }
 0x377   :  { %v1618_v11 = vpop.f32.mrf.mxu0 }
 0x378   :  { %v1619_v0 = vadd.f32 %v2677_v51, %v1618_v11  ;;  %v1707_v52 = vpop.f32.mrf.mxu1 }
 0x37a   :  { %v1708_v17 = vadd.f32 %v1707_v52, %v1619_v0 }
 0x37c   :  { %1760 = vst [vmem:[#allocation11 + $0x90] sm:$0xff] %v1708_v17 }
 0x37f   :  { %v1620_v53 = vpop.f32.mrf.mxu0 }
 0x380   :  { %v1621_v57 = vadd.f32 %v2677_v51, %v1620_v53  ;;  %v1709_v5 = vpop.f32.mrf.mxu1 }
 0x382   :  { %v1710_v6 = vadd.f32 %v1709_v5, %v1621_v57 }
 0x384   :  { %1761 = vst [vmem:[#allocation11 + $0x98] sm:$0xff] %v1710_v6 }
 0x387   :  { %v1623_v58 = vpop.f32.mrf.mxu0 }
 0x388   :  { %v1624_v2 = vadd.f32 %v2677_v51, %v1623_v58  ;;  %v1712_v59 = vpop.f32.mrf.mxu1 }
 0x38a   :  { %v1713_v13 = vadd.f32 %v1712_v59, %v1624_v2 }
 0x38c   :  { %1762 = vst [vmem:[#allocation11 + $0xa0] sm:$0xff] %v1713_v13 }
 0x38f   :  { %v1625_v49 = vpop.f32.mrf.mxu0 }
 0x390   :  { %v1626_v37 = vadd.f32 %v2677_v51, %v1625_v49  ;;  %v1714_v20 = vpop.f32.mrf.mxu1 }
 0x392   :  { %v1715_v63 = vadd.f32 %v1714_v20, %v1626_v37 }
 0x394   :  { %1763 = vst [vmem:[#allocation11 + $0xa8] sm:$0xff] %v1715_v63 }
 0x397   :  { %v1628_v45 = vpop.f32.mrf.mxu0 }
 0x398   :  { %v1629_v4 = vadd.f32 %v2677_v51, %v1628_v45  ;;  %v1717_v9 = vpop.f32.mrf.mxu1 }
 0x39a   :  { %v1718_v14 = vadd.f32 %v1717_v9, %v1629_v4 }
 0x39c   :  { %1764 = vst [vmem:[#allocation11 + $0xb0] sm:$0xff] %v1718_v14 }
 0x39f   :  { %v1630_v15 = vpop.f32.mrf.mxu0 }
 0x3a0   :  { %v1631_v18 = vadd.f32 %v2677_v51, %v1630_v15  ;;  %v1719_v19 = vpop.f32.mrf.mxu1 }
 0x3a2   :  { %v1720_v21 = vadd.f32 %v1719_v19, %v1631_v18 }
 0x3a4   :  { %1765 = vst [vmem:[#allocation11 + $0xb8] sm:$0xff] %v1720_v21 }
 0x3a7   :  { %v1633_v12 = vpop.f32.mrf.mxu0 }
 0x3a8   :  { %v1634_v34 = vadd.f32 %v2677_v51, %v1633_v12  ;;  %v1722_v10 = vpop.f32.mrf.mxu1 }
 0x3aa   :  { %v1723_v56 = vadd.f32 %v1722_v10, %v1634_v34 }
 0x3ac   :  { %1766 = vst [vmem:[#allocation11 + $0xc0] sm:$0xff] %v1723_v56 }
 0x3af   :  { %v1635_v8 = vpop.f32.mrf.mxu0 }
 0x3b0   :  { %v1636_v46 = vadd.f32 %v2677_v51, %v1635_v8  ;;  %v1724_v16 = vpop.f32.mrf.mxu1 }
 0x3b2   :  { %v1725_v44 = vadd.f32 %v1724_v16, %v1636_v46 }
 0x3b4   :  { %1767 = vst [vmem:[#allocation11 + $0xc8] sm:$0xff] %v1725_v44 }
 0x3b7   :  { %v1638_v60 = vpop.f32.mrf.mxu0 }
 0x3b8   :  { %v1639_v22 = vadd.f32 %v2677_v51, %v1638_v60  ;;  %v1727_v41 = vpop.f32.mrf.mxu1 }
 0x3ba   :  { %v1728_v23 = vadd.f32 %v1727_v41, %v1639_v22 }
 0x3bc   :  { %1768 = vst [vmem:[#allocation11 + $0xd0] sm:$0xff] %v1728_v23 }
 0x3bf   :  { %v1640_v26 = vpop.f32.mrf.mxu0 }
 0x3c0   :  { %v1641_v30 = vadd.f32 %v2677_v51, %v1640_v26  ;;  %v1729_v32 = vpop.f32.mrf.mxu1 }
 0x3c2   :  { %v1730_v33 = vadd.f32 %v1729_v32, %v1641_v30 }
 0x3c4   :  { %1769 = vst [vmem:[#allocation11 + $0xd8] sm:$0xff] %v1730_v33 }
 0x3c7   :  { %v1643_v35 = vpop.f32.mrf.mxu0 }
 0x3c8   :  { %v1644_v27 = vadd.f32 %v2677_v51, %v1643_v35  ;;  %v1732_v48 = vpop.f32.mrf.mxu1 }
 0x3ca   :  { %v1733_v42 = vadd.f32 %v1732_v48, %v1644_v27 }
 0x3cc   :  { %1770 = vst [vmem:[#allocation11 + $0xe0] sm:$0xff] %v1733_v42 }
 0x3cf   :  { %v1645_v55 = vpop.f32.mrf.mxu0 }
 0x3d0   :  { %v1646_v28 = vadd.f32 %v2677_v51, %v1645_v55  ;;  %v1734_v36 = vpop.f32.mrf.mxu1 }
 0x3d2   :  { %v1735_v38 = vadd.f32 %v1734_v36, %v1646_v28 }
 0x3d4   :  { %1771 = vst [vmem:[#allocation11 + $0xe8] sm:$0xff] %v1735_v38 }
 0x3d7   :  { %v1648_v29 = vpop.f32.mrf.mxu0 }
 0x3d8   :  { %v1649_v47 = vadd.f32 %v2677_v51, %v1648_v29  ;;  %v1737_v40 = vpop.f32.mrf.mxu1 }
 0x3da   :  { %v1738_v54 = vadd.f32 %v1737_v40, %v1649_v47 }
 0x3dc   :  { %1772 = vst [vmem:[#allocation11 + $0xf0] sm:$0xff] %v1738_v54 }
 0x3df   :  { %v1650_v62 = vpop.f32.mrf.mxu0 }
 0x3e0   :  { %v1651_v61 = vadd.f32 %v2677_v51, %v1650_v62  ;;  %v1739_v50 = vpop.f32.mrf.mxu1 }
 0x3e2   :  { %v1740_v39 = vadd.f32 %v1739_v50, %v1651_v61 }
 0x3e4   :  { %1773 = vst [vmem:[#allocation11 + $0xf8] sm:$0xff] %v1740_v39 }
 0x3e5   :  { %1786 = dma.vmem_to_hbm [thread:$0]  %s1779_s22, 4096, %s1781_s25, [#allocation5], %s2394_s17, %s2394_s17, %s2395_s18  }
 0x3e6   :  { %2385 = dma.done.wait [#allocation5], 4096  }
 0x3e7   :  { %2386 = vsyncadd [#allocation5], 4294963200 }
 0x3e8   :  { %1791 = vsyncpa [#allocation4], 1 }
 0x3e9   :  { %1792 = vsyncpa [#allocation7], 1 }
 0x3ea   :  { %1793 = vsyncpa [#allocation10], 1 }
 0x3eb   :  { %1794 = vsyncpa [#allocation5], 1 }

</bundles_post_ra>
